<compile_context>
chip_gen: v7x
topology: tpu7x:2x2x1
jax: 0.10.0
libtpu: 0.0.40
codegen_flags: <defaults>
</compile_context>

<pallas_src>
import functools
import math

import jax
import jax.numpy as jnp
from jax.experimental import pallas as pl
from jax.experimental.pallas import tpu as pltpu

LRELU_SLOPE = 0.1
TM_DEFAULT = 512        # M (lane) tile
TK_DEFAULT = 512        # K (contraction) tile


def round_up(x, m):
    return ((x + m - 1) // m) * m


def k_padded(k, tk_max=TK_DEFAULT):
    """Zero-pad K so it is sublane aligned and divisible by the K tile."""
    if k <= tk_max:
        return round_up(k, 8)
    return round_up(k, tk_max)


# ----------------------------------------------------------------------------
# Pallas kernel: grouped  out(G, N, M) = W(G, N, K) @ A_T(G, K, M) + b  (+LeakyReLU)
#   - M (large spatial dim) on lanes -> lane-dense stores
#   - K tiled on an 'arbitrary' reduction axis with a VMEM f32 accumulator
# ----------------------------------------------------------------------------
def pallas_grouped_matmul_bias_act(a_t, w, b, slope=None,
                                   tm=TM_DEFAULT, tk=TK_DEFAULT):
    """a_t: (G, Kp, M) bf16, w: (G, N, Kp) bf16, b: (G, N, 1) f32 -> (G, N, M) f32."""
    G, Kp, M = a_t.shape
    _, N, Kp2 = w.shape
    assert Kp == Kp2
    tm_eff = M if M <= tm else tm          # full-dim block or 128-multiple tile
    tk_eff = Kp if Kp <= tk else tk        # full-dim block or 512 (divides Kp)
    assert Kp % tk_eff == 0
    nm = pl.cdiv(M, tm_eff)
    nk = Kp // tk_eff

    def kernel(a_ref, w_ref, b_ref, o_ref, acc_ref):
        kk = pl.program_id(2)

        @pl.when(kk == 0)
        def _init():
            acc_ref[...] = jnp.zeros_like(acc_ref)

        acc_ref[...] += jnp.dot(w_ref[...], a_ref[...],
                                preferred_element_type=jnp.float32)

        @pl.when(kk == pl.num_programs(2) - 1)
        def _finalize():
            r = acc_ref[...] + b_ref[...]          # f32 bias
            if slope is not None:                  # fused LeakyReLU (f32)
                r = jnp.where(r >= 0, r, slope * r)
            o_ref[...] = r

    return pl.pallas_call(
        kernel,
        out_shape=jax.ShapeDtypeStruct((G, N, M), jnp.float32),
        grid=(G, nm, nk),
        in_specs=[
            pl.BlockSpec((None, tk_eff, tm_eff), lambda g, i, k: (g, k, i)),
            pl.BlockSpec((None, N, tk_eff), lambda g, i, k: (g, 0, k)),
            pl.BlockSpec((None, N, 1), lambda g, i, k: (g, 0, 0)),
        ],
        out_specs=pl.BlockSpec((None, N, tm_eff), lambda g, i, k: (g, 0, i)),
        scratch_shapes=[pltpu.VMEM((N, tm_eff), jnp.float32)],
        compiler_params=pltpu.CompilerParams(
            dimension_semantics=("parallel", "parallel", "arbitrary"),
            vmem_limit_bytes=48 * 1024 * 1024),
    )(a_t, w, b)


# ----------------------------------------------------------------------------
# Conv2d (NCHW) = im2col in (K, M) layout (bf16, single concat) + Pallas matmul
# ----------------------------------------------------------------------------
def im2col_kt(x, layer):
    """x: (B, C, H, W) -> (K_pad, B*Ho*Wo) bf16, K ordered as (kh, kw, c_in)."""
    B, C, H, W = x.shape
    kh_n, kw_n = layer["kh"], layer["kw"]
    sh, sw = layer["stride"]
    dh, dw = layer["dilation"]
    ph, pw = layer["padding"]
    kp = layer["k_pad"]

    xp = jnp.pad(x.astype(jnp.bfloat16), ((0, 0), (0, 0), (ph, ph), (pw, pw)))
    Hp, Wp = H + 2 * ph, W + 2 * pw
    Ho = (Hp - dh * (kh_n - 1) - 1) // sh + 1
    Wo = (Wp - dw * (kw_n - 1) - 1) // sw + 1
    xc = jnp.transpose(xp, (1, 0, 2, 3))                 # (C, B, Hp, Wp)
    M = B * Ho * Wo

    # TODO(synk): fuse this tap loop into the matmul kernel (per-tap index_map /
    # reduction grid axis) instead of materializing the (K, M) patch matrix in HBM.
    taps = []
    for i in range(kh_n):
        for j in range(kw_n):
            t = xc[:, :,
                   i * dh: i * dh + sh * (Ho - 1) + 1: sh,
                   j * dw: j * dw + sw * (Wo - 1) + 1: sw]   # (C, B, Ho, Wo)
            taps.append(t.reshape(C, M))
    K = C * kh_n * kw_n
    if kp > K:
        taps.append(jnp.zeros((kp - K, M), jnp.bfloat16))
    return jnp.concatenate(taps, axis=0), Ho, Wo


def conv2d_single(x, layer, act_slope=None):
    cols_t, Ho, Wo = im2col_kt(x, layer)
    out = pallas_grouped_matmul_bias_act(cols_t[None], layer["w"][None],
                                         layer["b"][None], slope=act_slope)
    B = x.shape[0]
    c_out = layer["w"].shape[0]
    out = out[0].reshape(c_out, B, Ho, Wo)
    return jnp.transpose(out, (1, 0, 2, 3))              # (B, C_out, Ho, Wo)


# ----------------------------------------------------------------------------
# Resample x2 and synthetic CQT analysis (basis precomputed at init)
# ----------------------------------------------------------------------------
def resample_2x(x):
    # TODO(synk): torchaudio.transforms.Resample (windowed-sinc) approximated
    # by 2x linear interpolation.
    x_next = jnp.concatenate([x[:, 1:], x[:, -1:]], axis=1)
    mid = 0.5 * (x + x_next)
    return jnp.stack([x, mid], axis=-1).reshape(x.shape[0], -1)


def make_cqt_basis_t(frame_len, n_bins, bins_per_octave, fmin, sr, l_pad):
    # TODO(synk): nnAudio CQT2010v2 replaced by a deterministic Hann-windowed
    # log-spaced complex basis applied per frame (same output shape/format).
    k = jnp.arange(n_bins, dtype=jnp.float32)
    freqs = fmin * 2.0 ** (k / bins_per_octave)
    n = jnp.arange(frame_len, dtype=jnp.float32)
    window = 0.5 - 0.5 * jnp.cos(2.0 * jnp.pi * n / frame_len)
    phase = 2.0 * jnp.pi * freqs[:, None] * n[None, :] / sr      # (n_bins, L)
    real = window[None, :] * jnp.cos(phase)
    imag = -window[None, :] * jnp.sin(phase)
    basis = jnp.stack([real, imag], axis=1).reshape(2 * n_bins, frame_len)
    basis = basis / frame_len
    if l_pad > frame_len:
        basis = jnp.pad(basis, ((0, 0), (0, l_pad - frame_len)))
    return basis.astype(jnp.bfloat16)                    # (2*n_bins, Lp)


def cqt_transform(x, disc):
    """x: (B, T2) at 2*fs -> (B, 2, n_frames, n_bins)  (channels = real, imag)."""
    hop = disc["hop_length"]
    n_bins = disc["n_bins"]
    L = disc["frame_len"]
    basis_t = disc["basis_t"]
    Lp = basis_t.shape[1]
    B, T2 = x.shape
    n_frames = T2 // hop + 1

    # 50%-overlap framing via hop-block reshape + concat (no fancy gather).
    T2p = round_up(T2, hop)
    xpad = jnp.pad(x, ((0, 0), (hop, hop + (T2p - T2))))
    hops = xpad.reshape(B, T2p // hop + 2, hop)
    frames = jnp.concatenate([hops[:, :n_frames], hops[:, 1:n_frames + 1]],
                             axis=-1)                    # (B, nf, L)
    M = B * n_frames
    frames2 = frames.reshape(M, L).astype(jnp.bfloat16)
    if Lp > L:
        frames2 = jnp.pad(frames2, ((0, 0), (0, Lp - L)))
    frames_t = jnp.transpose(frames2, (1, 0))            # (Lp, M), lanes = M

    out = pallas_grouped_matmul_bias_act(frames_t[None], basis_t[None],
                                         disc["cqt_bias"][None], slope=None)
    z = out[0].reshape(n_bins, 2, B, n_frames)
    return jnp.transpose(z, (2, 1, 3, 0))                # (B, 2, Tf, n_bins)


# ----------------------------------------------------------------------------
# Parameter construction (deterministic; weight prep hoisted to init)
# ----------------------------------------------------------------------------
def get_2d_padding(kernel_size, dilation=(1, 1)):
    return (((kernel_size[0] - 1) * dilation[0]) // 2,
            ((kernel_size[1] - 1) * dilation[1]) // 2)


def make_layer(key, c_out, c_in, kh, kw, stride, dilation, padding):
    k1, k2 = jax.random.split(key)
    scale = 1.0 / math.sqrt(c_in * kh * kw)
    w = jax.random.normal(k1, (c_out, c_in, kh, kw), jnp.float32) * scale
    b = jax.random.normal(k2, (c_out,), jnp.float32) * scale
    K = c_in * kh * kw
    kp = k_padded(K)
    # (C_out, K) with K ordered (kh, kw, c_in), zero-padded, bf16 for the MXU.
    w2 = jnp.transpose(w, (0, 2, 3, 1)).reshape(c_out, K)
    w2 = jnp.pad(w2, ((0, 0), (0, kp - K))).astype(jnp.bfloat16)
    return dict(w=w2, b=b.reshape(c_out, 1).astype(jnp.float32),
                kh=kh, kw=kw, stride=stride, dilation=dilation,
                padding=padding, c_in=c_in, k_pad=kp)


def init_discriminator(key, cfg, hop_length, n_octaves, bins_per_octave):
    filters = cfg["filters"]
    max_filters = cfg["max_filters"]
    filters_scale = cfg["filters_scale"]
    dilations = cfg["dilations"]
    in_ch = cfg["in_channels"] * 2
    out_channels = cfg["out_channels"]
    ks = (3, 9)

    n_keys = n_octaves + 1 + len(dilations) + 1 + 1
    keys = jax.random.split(key, n_keys)
    ki = 0

    # conv_pres: identical geometry across octaves -> grouped (stacked) weights.
    pres = []
    for _ in range(n_octaves):
        pres.append(make_layer(keys[ki], in_ch, in_ch, *ks, stride=(1, 1),
                               dilation=(1, 1), padding=get_2d_padding(ks)))
        ki += 1
    conv_pres = dict(
        w=jnp.stack([p["w"] for p in pres], axis=0),
        b=jnp.stack([p["b"] for p in pres], axis=0),
        kh=ks[0], kw=ks[1], stride=(1, 1), dilation=(1, 1),
        padding=get_2d_padding(ks), c_in=in_ch, k_pad=pres[0]["k_pad"])

    convs = []
    convs.append(make_layer(keys[ki], filters, in_ch, *ks, stride=(1, 1),
                            dilation=(1, 1), padding=get_2d_padding(ks)))
    ki += 1
    in_chs = min(filters_scale * filters, max_filters)
    for i, d in enumerate(dilations):
        out_chs = min(filters_scale ** (i + 1) * filters, max_filters)
        convs.append(make_layer(keys[ki], out_chs, in_chs, *ks, stride=(1, 2),
                                dilation=(d, 1),
                                padding=get_2d_padding(ks, (d, 1))))
        ki += 1
        in_chs = out_chs
    out_chs = min(filters_scale ** (len(dilations) + 1) * filters, max_filters)
    convs.append(make_layer(keys[ki], out_chs, in_chs, 3, 3, stride=(1, 1),
                            dilation=(1, 1), padding=get_2d_padding((3, 3))))
    ki += 1
    conv_post = make_layer(keys[ki], out_channels, out_chs, 3, 3, stride=(1, 1),
                           dilation=(1, 1), padding=get_2d_padding((3, 3)))

    # Precomputed synthetic CQT basis (hoisted out of the forward pass).
    n_bins = n_octaves * bins_per_octave
    frame_len = 2 * hop_length
    l_pad = k_padded(frame_len)
    basis_t = make_cqt_basis_t(frame_len, n_bins, bins_per_octave, fmin=8.0,
                               sr=2 * cfg["sample_rate"], l_pad=l_pad)
    cqt_bias = jnp.zeros((2 * n_bins, 1), jnp.float32)

    return dict(conv_pres=conv_pres, convs=convs, conv_post=conv_post,
                hop_length=hop_length, n_octaves=n_octaves,
                bins_per_octave=bins_per_octave, n_bins=n_bins,
                frame_len=frame_len, basis_t=basis_t, cqt_bias=cqt_bias)


# ----------------------------------------------------------------------------
# Forward passes
# ----------------------------------------------------------------------------
def discriminator_cqt_forward(disc, x):
    """x: (B2, T) -> (output, fmap list).  Batch may contain y and y_hat together."""
    x2 = resample_2x(x)                                  # fs -> 2*fs
    z = cqt_transform(x2, disc)                          # (B2, 2, Tf, n_bins)
    # NOTE: channel 0/1 are the real/imag CQT components ("amplitude"/"phase"
    # naming follows the reference module's Complex output indexing).

    bpo = disc["bins_per_octave"]
    noct = disc["n_octaves"]
    pre = disc["conv_pres"]

    # Grouped conv_pres: one pallas_call over all octave sub-bands.
    cols, Ho, Wo = [], None, None
    for i in range(noct):
        c_t, Ho, Wo = im2col_kt(z[:, :, :, i * bpo:(i + 1) * bpo], pre)
        cols.append(c_t)
    a_t = jnp.stack(cols, axis=0)                        # (G, Kp, M)
    pre_out = pallas_grouped_matmul_bias_act(a_t, pre["w"], pre["b"], slope=None)

    B2 = x.shape[0]
    c_pre = pre["w"].shape[1]
    pre_out = pre_out.reshape(noct, c_pre, B2, Ho, Wo)
    latent = jnp.transpose(pre_out, (2, 1, 3, 0, 4)).reshape(
        B2, c_pre, Ho, noct * Wo)                        # concat over freq

    fmap = []
    for layer in disc["convs"]:
        latent = conv2d_single(latent, layer, act_slope=LRELU_SLOPE)  # fused LReLU
        fmap.append(latent)

    out = conv2d_single(latent, disc["conv_post"], act_slope=None)
    return out, fmap


def mssbcqtd_forward(discs, y, y_hat):
    B = y.shape[0]
    # Batch real and generated audio through each discriminator in one pass
    # (doubles M per pallas_call, halves call count).
    x = jnp.concatenate([y, y_hat], axis=0)
    y_d_rs, y_d_gs, fmap_rs, fmap_gs = [], [], [], []
    for disc in discs:
        fwd = jax.jit(functools.partial(discriminator_cqt_forward, disc))
        out, fmap = fwd(x)
        y_d_rs.append(out[:B])
        y_d_gs.append(out[B:])
        fmap_rs.append([f[:B] for f in fmap])
        fmap_gs.append([f[B:] for f in fmap])
    return y_d_rs, y_d_gs, fmap_rs, fmap_gs


# ----------------------------------------------------------------------------
if __name__ == "__main__":
    cfg = dict(
        filters=8, max_filters=16, filters_scale=1, dilations=[1, 2],
        in_channels=1, out_channels=1,
        hop_lengths=[64, 128], n_octaves=[2, 2], bins_per_octaves=[4, 4],
        sample_rate=256,
    )

    key = jax.random.PRNGKey(0)
    k_params, k_y, k_yh = jax.random.split(key, 3)
    B, T = 2, 256
    y = jax.random.normal(k_y, (B, T), jnp.float32)
    y_hat = jax.random.normal(k_yh, (B, T), jnp.float32)

    dkeys = jax.random.split(k_params, len(cfg["hop_lengths"]))
    discs = [
        init_discriminator(dkeys[i], cfg, cfg["hop_lengths"][i],
                           cfg["n_octaves"][i], cfg["bins_per_octaves"][i])
        for i in range(len(cfg["hop_lengths"]))
    ]

    y_d_rs, y_d_gs, fmap_rs, fmap_gs = mssbcqtd_forward(discs, y, y_hat)

    jax.block_until_ready(y_d_rs)
    jax.block_until_ready(y_d_gs)
    jax.block_until_ready(fmap_rs)
    jax.block_until_ready(fmap_gs)
    print("KERNEL_OK")
</pallas_src>

<mosaic_0001>
module attributes {stable_mosaic.version = 11 : i64} {
  func.func @kernel(%arg0: i32, %arg1: i32, %arg2: i32, %arg3: memref<1x128x36xbf16, #tpu.memory_space<vmem>>, %arg4: memref<1x16x128xbf16, #tpu.memory_space<vmem>>, %arg5: memref<1x16x1xf32, #tpu.memory_space<vmem>>, %arg6: memref<1x16x36xf32, #tpu.memory_space<vmem>>, %arg7: memref<16x36xf32, #tpu.memory_space<vmem>>) attributes {dimension_semantics = [#tpu.dimension_semantics<parallel>, #tpu.dimension_semantics<parallel>, #tpu.dimension_semantics<arbitrary>], iteration_bounds = array<i64: 1, 1, 1>, scalar_prefetch = 0 : i64, scratch_operands = 1 : i64, tpu.core_type = #tpu.core_type<tc>, window_params = [{transform_indices = @transform_0, window_bounds = array<i64: 1, 128, 36>}, {transform_indices = @transform_1, window_bounds = array<i64: 1, 16, 128>}, {transform_indices = @transform_2, window_bounds = array<i64: 1, 16, 1>}, {transform_indices = @transform_3, window_bounds = array<i64: 1, 16, 36>}]} {
    %c0_i32 = arith.constant 0 : i32
    %0 = arith.cmpi eq, %arg2, %c0_i32 : i32
    %1 = arith.extui %0 : i1 to i32
    %c0_i32_0 = arith.constant 0 : i32
    %2 = arith.cmpi ne, %1, %c0_i32_0 : i32
    scf.if %2 {
      %cst_12 = arith.constant 0.000000e+00 : f32
      %14 = vector.broadcast %cst_12 : f32 to vector<16x36xf32>
      %c0_13 = arith.constant 0 : index
      %c0_14 = arith.constant 0 : index
      %15 = vector.load %arg7[%c0_13, %c0_14] : memref<16x36xf32, #tpu.memory_space<vmem>>, vector<16x36xf32>
      tpu.vector_store %arg7[%c0_13, %c0_14], %14 {strides = array<i32>} : memref<16x36xf32, #tpu.memory_space<vmem>>, vector<16x36xf32>,
    } else {
    }
    %c0 = arith.constant 0 : index
    %c0_1 = arith.constant 0 : index
    %3 = vector.load %arg7[%c0, %c0_1] : memref<16x36xf32, #tpu.memory_space<vmem>>, vector<16x36xf32>
    %c0_2 = arith.constant 0 : index
    %c0_3 = arith.constant 0 : index
    %c0_4 = arith.constant 0 : index
    %4 = vector.load %arg4[%c0_2, %c0_3, %c0_4] : memref<1x16x128xbf16, #tpu.memory_space<vmem>>, vector<1x16x128xbf16>
    %5 = vector.shape_cast %4 : vector<1x16x128xbf16> to vector<16x128xbf16>
    %c0_5 = arith.constant 0 : index
    %c0_6 = arith.constant 0 : index
    %c0_7 = arith.constant 0 : index
    %6 = vector.load %arg3[%c0_5, %c0_6, %c0_7] : memref<1x128x36xbf16, #tpu.memory_space<vmem>>, vector<1x128x36xbf16>
    %7 = vector.shape_cast %6 : vector<1x128x36xbf16> to vector<128x36xbf16>
    %cst = arith.constant dense<0.000000e+00> : vector<16x36xf32>
    %8 = tpu.matmul %5, %7, %cst {dimension_numbers = #tpu.dot_dimension_numbers<[1], [0], [0], [1], [0, 0, 1, 1], [], []>} : vector<16x128xbf16>, vector<128x36xbf16>, vector<16x36xf32> -> vector<16x36xf32>
    %9 = arith.addf %3, %8 : vector<16x36xf32>
    %c0_8 = arith.constant 0 : index
    %c0_9 = arith.constant 0 : index
    %10 = vector.load %arg7[%c0_8, %c0_9] : memref<16x36xf32, #tpu.memory_space<vmem>>, vector<16x36xf32>
    tpu.vector_store %arg7[%c0_8, %c0_9], %9 {strides = array<i32>} : memref<16x36xf32, #tpu.memory_space<vmem>>, vector<16x36xf32>,
    %c0_i32_10 = arith.constant 0 : i32
    %11 = arith.cmpi eq, %arg2, %c0_i32_10 : i32
    %12 = arith.extui %11 : i1 to i32
    %c0_i32_11 = arith.constant 0 : i32
    %13 = arith.cmpi ne, %12, %c0_i32_11 : i32
    scf.if %13 {
      %c0_12 = arith.constant 0 : index
      %c0_13 = arith.constant 0 : index
      %14 = vector.load %arg7[%c0_12, %c0_13] : memref<16x36xf32, #tpu.memory_space<vmem>>, vector<16x36xf32>
      %c0_14 = arith.constant 0 : index
      %c0_15 = arith.constant 0 : index
      %c0_16 = arith.constant 0 : index
      %15 = vector.load %arg5[%c0_14, %c0_15, %c0_16] : memref<1x16x1xf32, #tpu.memory_space<vmem>>, vector<1x16x1xf32>
      %16 = vector.shape_cast %15 : vector<1x16x1xf32> to vector<16x1xf32>
      %17 = vector.broadcast %16 : vector<16x1xf32> to vector<16x36xf32>
      %18 = arith.addf %14, %17 : vector<16x36xf32>
      %c0_17 = arith.constant 0 : index
      %c0_18 = arith.constant 0 : index
      %c0_19 = arith.constant 0 : index
      %19 = vector.load %arg6[%c0_17, %c0_18, %c0_19] : memref<1x16x36xf32, #tpu.memory_space<vmem>>, vector<1x16x36xf32>
      %20 = vector.shape_cast %19 : vector<1x16x36xf32> to vector<16x36xf32>
      %21 = vector.shape_cast %18 : vector<16x36xf32> to vector<1x16x36xf32>
      tpu.vector_store %arg6[%c0_17, %c0_18, %c0_19], %21 {strides = array<i32>} : memref<1x16x36xf32, #tpu.memory_space<vmem>>, vector<1x16x36xf32>,
    } else {
    }
    return
  }
  func.func @transform_0(%arg0: i32, %arg1: i32, %arg2: i32) -> (i32, i32, i32) {
    %c0_i32 = arith.constant 0 : i32
    return %arg0, %arg2, %arg1 : i32, i32, i32
  }
  func.func @transform_1(%arg0: i32, %arg1: i32, %arg2: i32) -> (i32, i32, i32) {
    %c0_i32 = arith.constant 0 : i32
    %c0_i32_0 = arith.constant 0 : i32
    return %arg0, %c0_i32, %arg2 : i32, i32, i32
  }
  func.func @transform_2(%arg0: i32, %arg1: i32, %arg2: i32) -> (i32, i32, i32) {
    %c0_i32 = arith.constant 0 : i32
    %c0_i32_0 = arith.constant 0 : i32
    %c0_i32_1 = arith.constant 0 : i32
    return %arg0, %c0_i32, %c0_i32_0 : i32, i32, i32
  }
  func.func @transform_3(%arg0: i32, %arg1: i32, %arg2: i32) -> (i32, i32, i32) {
    %c0_i32 = arith.constant 0 : i32
    %c0_i32_0 = arith.constant 0 : i32
    return %arg0, %c0_i32, %arg1 : i32, i32, i32
  }
}

module attributes {stable_mosaic.version = 11 : i64} {
  func.func @kernel(%arg0: i32, %arg1: i32, %arg2: i32, %arg3: memref<1x56x144xbf16, #tpu.memory_space<vmem>>, %arg4: memref<1x2x56xbf16, #tpu.memory_space<vmem>>, %arg5: memref<1x2x1xf32, #tpu.memory_space<vmem>>, %arg6: memref<1x2x144xf32, #tpu.memory_space<vmem>>, %arg7: memref<2x144xf32, #tpu.memory_space<vmem>>) attributes {dimension_semantics = [#tpu.dimension_semantics<parallel>, #tpu.dimension_semantics<parallel>, #tpu.dimension_semantics<arbitrary>], iteration_bounds = array<i64: 2, 1, 1>, scalar_prefetch = 0 : i64, scratch_operands = 1 : i64, tpu.core_type = #tpu.core_type<tc>, window_params = [{transform_indices = @transform_0, window_bounds = array<i64: 1, 56, 144>}, {transform_indices = @transform_1, window_bounds = array<i64: 1, 2, 56>}, {transform_indices = @transform_2, window_bounds = array<i64: 1, 2, 1>}, {transform_indices = @transform_3, window_bounds = array<i64: 1, 2, 144>}]} {
    %c0_i32 = arith.constant 0 : i32
    %0 = arith.cmpi eq, %arg2, %c0_i32 : i32
    %1 = arith.extui %0 : i1 to i32
    %c0_i32_0 = arith.constant 0 : i32
    %2 = arith.cmpi ne, %1, %c0_i32_0 : i32
    scf.if %2 {
      %cst_12 = arith.constant 0.000000e+00 : f32
      %14 = vector.broadcast %cst_12 : f32 to vector<2x144xf32>
      %c0_13 = arith.constant 0 : index
      %c0_14 = arith.constant 0 : index
      %15 = vector.load %arg7[%c0_13, %c0_14] : memref<2x144xf32, #tpu.memory_space<vmem>>, vector<2x144xf32>
      tpu.vector_store %arg7[%c0_13, %c0_14], %14 {strides = array<i32>} : memref<2x144xf32, #tpu.memory_space<vmem>>, vector<2x144xf32>,
    } else {
    }
    %c0 = arith.constant 0 : index
    %c0_1 = arith.constant 0 : index
    %3 = vector.load %arg7[%c0, %c0_1] : memref<2x144xf32, #tpu.memory_space<vmem>>, vector<2x144xf32>
    %c0_2 = arith.constant 0 : index
    %c0_3 = arith.constant 0 : index
    %c0_4 = arith.constant 0 : index
    %4 = vector.load %arg4[%c0_2, %c0_3, %c0_4] : memref<1x2x56xbf16, #tpu.memory_space<vmem>>, vector<1x2x56xbf16>
    %5 = vector.shape_cast %4 : vector<1x2x56xbf16> to vector<2x56xbf16>
    %c0_5 = arith.constant 0 : index
    %c0_6 = arith.constant 0 : index
    %c0_7 = arith.constant 0 : index
    %6 = vector.load %arg3[%c0_5, %c0_6, %c0_7] : memref<1x56x144xbf16, #tpu.memory_space<vmem>>, vector<1x56x144xbf16>
    %7 = vector.shape_cast %6 : vector<1x56x144xbf16> to vector<56x144xbf16>
    %cst = arith.constant dense<0.000000e+00> : vector<2x144xf32>
    %8 = tpu.matmul %5, %7, %cst {dimension_numbers = #tpu.dot_dimension_numbers<[1], [0], [0], [1], [0, 0, 1, 1], [], []>} : vector<2x56xbf16>, vector<56x144xbf16>, vector<2x144xf32> -> vector<2x144xf32>
    %9 = arith.addf %3, %8 : vector<2x144xf32>
    %c0_8 = arith.constant 0 : index
    %c0_9 = arith.constant 0 : index
    %10 = vector.load %arg7[%c0_8, %c0_9] : memref<2x144xf32, #tpu.memory_space<vmem>>, vector<2x144xf32>
    tpu.vector_store %arg7[%c0_8, %c0_9], %9 {strides = array<i32>} : memref<2x144xf32, #tpu.memory_space<vmem>>, vector<2x144xf32>,
    %c0_i32_10 = arith.constant 0 : i32
    %11 = arith.cmpi eq, %arg2, %c0_i32_10 : i32
    %12 = arith.extui %11 : i1 to i32
    %c0_i32_11 = arith.constant 0 : i32
    %13 = arith.cmpi ne, %12, %c0_i32_11 : i32
    scf.if %13 {
      %c0_12 = arith.constant 0 : index
      %c0_13 = arith.constant 0 : index
      %14 = vector.load %arg7[%c0_12, %c0_13] : memref<2x144xf32, #tpu.memory_space<vmem>>, vector<2x144xf32>
      %c0_14 = arith.constant 0 : index
      %c0_15 = arith.constant 0 : index
      %c0_16 = arith.constant 0 : index
      %15 = vector.load %arg5[%c0_14, %c0_15, %c0_16] : memref<1x2x1xf32, #tpu.memory_space<vmem>>, vector<1x2x1xf32>
      %16 = vector.shape_cast %15 : vector<1x2x1xf32> to vector<2x1xf32>
      %17 = vector.broadcast %16 : vector<2x1xf32> to vector<2x144xf32>
      %18 = arith.addf %14, %17 : vector<2x144xf32>
      %c0_17 = arith.constant 0 : index
      %c0_18 = arith.constant 0 : index
      %c0_19 = arith.constant 0 : index
      %19 = vector.load %arg6[%c0_17, %c0_18, %c0_19] : memref<1x2x144xf32, #tpu.memory_space<vmem>>, vector<1x2x144xf32>
      %20 = vector.shape_cast %19 : vector<1x2x144xf32> to vector<2x144xf32>
      %21 = vector.shape_cast %18 : vector<2x144xf32> to vector<1x2x144xf32>
      tpu.vector_store %arg6[%c0_17, %c0_18, %c0_19], %21 {strides = array<i32>} : memref<1x2x144xf32, #tpu.memory_space<vmem>>, vector<1x2x144xf32>,
    } else {
    }
    return
  }
  func.func @transform_0(%arg0: i32, %arg1: i32, %arg2: i32) -> (i32, i32, i32) {
    %c0_i32 = arith.constant 0 : i32
    return %arg0, %arg2, %arg1 : i32, i32, i32
  }
  func.func @transform_1(%arg0: i32, %arg1: i32, %arg2: i32) -> (i32, i32, i32) {
    %c0_i32 = arith.constant 0 : i32
    %c0_i32_0 = arith.constant 0 : i32
    return %arg0, %c0_i32, %arg2 : i32, i32, i32
  }
  func.func @transform_2(%arg0: i32, %arg1: i32, %arg2: i32) -> (i32, i32, i32) {
    %c0_i32 = arith.constant 0 : i32
    %c0_i32_0 = arith.constant 0 : i32
    %c0_i32_1 = arith.constant 0 : i32
    return %arg0, %c0_i32, %c0_i32_0 : i32, i32, i32
  }
  func.func @transform_3(%arg0: i32, %arg1: i32, %arg2: i32) -> (i32, i32, i32) {
    %c0_i32 = arith.constant 0 : i32
    %c0_i32_0 = arith.constant 0 : i32
    return %arg0, %c0_i32, %arg1 : i32, i32, i32
  }
}

module attributes {stable_mosaic.version = 11 : i64} {
  func.func @kernel(%arg0: i32, %arg1: i32, %arg2: i32, %arg3: memref<1x56x288xbf16, #tpu.memory_space<vmem>>, %arg4: memref<1x8x56xbf16, #tpu.memory_space<vmem>>, %arg5: memref<1x8x1xf32, #tpu.memory_space<vmem>>, %arg6: memref<1x8x288xf32, #tpu.memory_space<vmem>>, %arg7: memref<8x288xf32, #tpu.memory_space<vmem>>) attributes {dimension_semantics = [#tpu.dimension_semantics<parallel>, #tpu.dimension_semantics<parallel>, #tpu.dimension_semantics<arbitrary>], iteration_bounds = array<i64: 1, 1, 1>, scalar_prefetch = 0 : i64, scratch_operands = 1 : i64, tpu.core_type = #tpu.core_type<tc>, window_params = [{transform_indices = @transform_0, window_bounds = array<i64: 1, 56, 288>}, {transform_indices = @transform_1, window_bounds = array<i64: 1, 8, 56>}, {transform_indices = @transform_2, window_bounds = array<i64: 1, 8, 1>}, {transform_indices = @transform_3, window_bounds = array<i64: 1, 8, 288>}]} {
    %c0_i32 = arith.constant 0 : i32
    %0 = arith.cmpi eq, %arg2, %c0_i32 : i32
    %1 = arith.extui %0 : i1 to i32
    %c0_i32_0 = arith.constant 0 : i32
    %2 = arith.cmpi ne, %1, %c0_i32_0 : i32
    scf.if %2 {
      %cst_12 = arith.constant 0.000000e+00 : f32
      %14 = vector.broadcast %cst_12 : f32 to vector<8x288xf32>
      %c0_13 = arith.constant 0 : index
      %c0_14 = arith.constant 0 : index
      %15 = vector.load %arg7[%c0_13, %c0_14] : memref<8x288xf32, #tpu.memory_space<vmem>>, vector<8x288xf32>
      tpu.vector_store %arg7[%c0_13, %c0_14], %14 {strides = array<i32>} : memref<8x288xf32, #tpu.memory_space<vmem>>, vector<8x288xf32>,
    } else {
    }
    %c0 = arith.constant 0 : index
    %c0_1 = arith.constant 0 : index
    %3 = vector.load %arg7[%c0, %c0_1] : memref<8x288xf32, #tpu.memory_space<vmem>>, vector<8x288xf32>
    %c0_2 = arith.constant 0 : index
    %c0_3 = arith.constant 0 : index
    %c0_4 = arith.constant 0 : index
    %4 = vector.load %arg4[%c0_2, %c0_3, %c0_4] : memref<1x8x56xbf16, #tpu.memory_space<vmem>>, vector<1x8x56xbf16>
    %5 = vector.shape_cast %4 : vector<1x8x56xbf16> to vector<8x56xbf16>
    %c0_5 = arith.constant 0 : index
    %c0_6 = arith.constant 0 : index
    %c0_7 = arith.constant 0 : index
    %6 = vector.load %arg3[%c0_5, %c0_6, %c0_7] : memref<1x56x288xbf16, #tpu.memory_space<vmem>>, vector<1x56x288xbf16>
    %7 = vector.shape_cast %6 : vector<1x56x288xbf16> to vector<56x288xbf16>
    %cst = arith.constant dense<0.000000e+00> : vector<8x288xf32>
    %8 = tpu.matmul %5, %7, %cst {dimension_numbers = #tpu.dot_dimension_numbers<[1], [0], [0], [1], [0, 0, 1, 1], [], []>} : vector<8x56xbf16>, vector<56x288xbf16>, vector<8x288xf32> -> vector<8x288xf32>
    %9 = arith.addf %3, %8 : vector<8x288xf32>
    %c0_8 = arith.constant 0 : index
    %c0_9 = arith.constant 0 : index
    %10 = vector.load %arg7[%c0_8, %c0_9] : memref<8x288xf32, #tpu.memory_space<vmem>>, vector<8x288xf32>
    tpu.vector_store %arg7[%c0_8, %c0_9], %9 {strides = array<i32>} : memref<8x288xf32, #tpu.memory_space<vmem>>, vector<8x288xf32>,
    %c0_i32_10 = arith.constant 0 : i32
    %11 = arith.cmpi eq, %arg2, %c0_i32_10 : i32
    %12 = arith.extui %11 : i1 to i32
    %c0_i32_11 = arith.constant 0 : i32
    %13 = arith.cmpi ne, %12, %c0_i32_11 : i32
    scf.if %13 {
      %c0_12 = arith.constant 0 : index
      %c0_13 = arith.constant 0 : index
      %14 = vector.load %arg7[%c0_12, %c0_13] : memref<8x288xf32, #tpu.memory_space<vmem>>, vector<8x288xf32>
      %c0_14 = arith.constant 0 : index
      %c0_15 = arith.constant 0 : index
      %c0_16 = arith.constant 0 : index
      %15 = vector.load %arg5[%c0_14, %c0_15, %c0_16] : memref<1x8x1xf32, #tpu.memory_space<vmem>>, vector<1x8x1xf32>
      %16 = vector.shape_cast %15 : vector<1x8x1xf32> to vector<8x1xf32>
      %17 = vector.broadcast %16 : vector<8x1xf32> to vector<8x288xf32>
      %18 = arith.addf %14, %17 : vector<8x288xf32>
      %cst_17 = arith.constant 0.000000e+00 : f32
      %19 = vector.broadcast %cst_17 : f32 to vector<8x288xf32>
      %20 = arith.cmpf oge, %18, %19 : vector<8x288xf32>
      %cst_18 = arith.constant 1.000000e-01 : f32
      %21 = vector.broadcast %cst_18 : f32 to vector<8x288xf32>
      %22 = arith.mulf %21, %18 : vector<8x288xf32>
      %23 = arith.select %20, %18, %22 : vector<8x288xi1>, vector<8x288xf32>
      %c0_19 = arith.constant 0 : index
      %c0_20 = arith.constant 0 : index
      %c0_21 = arith.constant 0 : index
      %24 = vector.load %arg6[%c0_19, %c0_20, %c0_21] : memref<1x8x288xf32, #tpu.memory_space<vmem>>, vector<1x8x288xf32>
      %25 = vector.shape_cast %24 : vector<1x8x288xf32> to vector<8x288xf32>
      %26 = vector.shape_cast %23 : vector<8x288xf32> to vector<1x8x288xf32>
      tpu.vector_store %arg6[%c0_19, %c0_20, %c0_21], %26 {strides = array<i32>} : memref<1x8x288xf32, #tpu.memory_space<vmem>>, vector<1x8x288xf32>,
    } else {
    }
    return
  }
  func.func @transform_0(%arg0: i32, %arg1: i32, %arg2: i32) -> (i32, i32, i32) {
    %c0_i32 = arith.constant 0 : i32
    return %arg0, %arg2, %arg1 : i32, i32, i32
  }
  func.func @transform_1(%arg0: i32, %arg1: i32, %arg2: i32) -> (i32, i32, i32) {
    %c0_i32 = arith.constant 0 : i32
    %c0_i32_0 = arith.constant 0 : i32
    return %arg0, %c0_i32, %arg2 : i32, i32, i32
  }
  func.func @transform_2(%arg0: i32, %arg1: i32, %arg2: i32) -> (i32, i32, i32) {
    %c0_i32 = arith.constant 0 : i32
    %c0_i32_0 = arith.constant 0 : i32
    %c0_i32_1 = arith.constant 0 : i32
    return %arg0, %c0_i32, %c0_i32_0 : i32, i32, i32
  }
  func.func @transform_3(%arg0: i32, %arg1: i32, %arg2: i32) -> (i32, i32, i32) {
    %c0_i32 = arith.constant 0 : i32
    %c0_i32_0 = arith.constant 0 : i32
    return %arg0, %c0_i32, %arg1 : i32, i32, i32
  }
}

module attributes {stable_mosaic.version = 11 : i64} {
  func.func @kernel(%arg0: i32, %arg1: i32, %arg2: i32, %arg3: memref<1x216x144xbf16, #tpu.memory_space<vmem>>, %arg4: memref<1x8x216xbf16, #tpu.memory_space<vmem>>, %arg5: memref<1x8x1xf32, #tpu.memory_space<vmem>>, %arg6: memref<1x8x144xf32, #tpu.memory_space<vmem>>, %arg7: memref<8x144xf32, #tpu.memory_space<vmem>>) attributes {dimension_semantics = [#tpu.dimension_semantics<parallel>, #tpu.dimension_semantics<parallel>, #tpu.dimension_semantics<arbitrary>], iteration_bounds = array<i64: 1, 1, 1>, scalar_prefetch = 0 : i64, scratch_operands = 1 : i64, tpu.core_type = #tpu.core_type<tc>, window_params = [{transform_indices = @transform_0, window_bounds = array<i64: 1, 216, 144>}, {transform_indices = @transform_1, window_bounds = array<i64: 1, 8, 216>}, {transform_indices = @transform_2, window_bounds = array<i64: 1, 8, 1>}, {transform_indices = @transform_3, window_bounds = array<i64: 1, 8, 144>}]} {
    %c0_i32 = arith.constant 0 : i32
    %0 = arith.cmpi eq, %arg2, %c0_i32 : i32
    %1 = arith.extui %0 : i1 to i32
    %c0_i32_0 = arith.constant 0 : i32
    %2 = arith.cmpi ne, %1, %c0_i32_0 : i32
    scf.if %2 {
      %cst_12 = arith.constant 0.000000e+00 : f32
      %14 = vector.broadcast %cst_12 : f32 to vector<8x144xf32>
      %c0_13 = arith.constant 0 : index
      %c0_14 = arith.constant 0 : index
      %15 = vector.load %arg7[%c0_13, %c0_14] : memref<8x144xf32, #tpu.memory_space<vmem>>, vector<8x144xf32>
      tpu.vector_store %arg7[%c0_13, %c0_14], %14 {strides = array<i32>} : memref<8x144xf32, #tpu.memory_space<vmem>>, vector<8x144xf32>,
    } else {
    }
    %c0 = arith.constant 0 : index
    %c0_1 = arith.constant 0 : index
    %3 = vector.load %arg7[%c0, %c0_1] : memref<8x144xf32, #tpu.memory_space<vmem>>, vector<8x144xf32>
    %c0_2 = arith.constant 0 : index
    %c0_3 = arith.constant 0 : index
    %c0_4 = arith.constant 0 : index
    %4 = vector.load %arg4[%c0_2, %c0_3, %c0_4] : memref<1x8x216xbf16, #tpu.memory_space<vmem>>, vector<1x8x216xbf16>
    %5 = vector.shape_cast %4 : vector<1x8x216xbf16> to vector<8x216xbf16>
    %c0_5 = arith.constant 0 : index
    %c0_6 = arith.constant 0 : index
    %c0_7 = arith.constant 0 : index
    %6 = vector.load %arg3[%c0_5, %c0_6, %c0_7] : memref<1x216x144xbf16, #tpu.memory_space<vmem>>, vector<1x216x144xbf16>
    %7 = vector.shape_cast %6 : vector<1x216x144xbf16> to vector<216x144xbf16>
    %cst = arith.constant dense<0.000000e+00> : vector<8x144xf32>
    %8 = tpu.matmul %5, %7, %cst {dimension_numbers = #tpu.dot_dimension_numbers<[1], [0], [0], [1], [0, 0, 1, 1], [], []>} : vector<8x216xbf16>, vector<216x144xbf16>, vector<8x144xf32> -> vector<8x144xf32>
    %9 = arith.addf %3, %8 : vector<8x144xf32>
    %c0_8 = arith.constant 0 : index
    %c0_9 = arith.constant 0 : index
    %10 = vector.load %arg7[%c0_8, %c0_9] : memref<8x144xf32, #tpu.memory_space<vmem>>, vector<8x144xf32>
    tpu.vector_store %arg7[%c0_8, %c0_9], %9 {strides = array<i32>} : memref<8x144xf32, #tpu.memory_space<vmem>>, vector<8x144xf32>,
    %c0_i32_10 = arith.constant 0 : i32
    %11 = arith.cmpi eq, %arg2, %c0_i32_10 : i32
    %12 = arith.extui %11 : i1 to i32
    %c0_i32_11 = arith.constant 0 : i32
    %13 = arith.cmpi ne, %12, %c0_i32_11 : i32
    scf.if %13 {
      %c0_12 = arith.constant 0 : index
      %c0_13 = arith.constant 0 : index
      %14 = vector.load %arg7[%c0_12, %c0_13] : memref<8x144xf32, #tpu.memory_space<vmem>>, vector<8x144xf32>
      %c0_14 = arith.constant 0 : index
      %c0_15 = arith.constant 0 : index
      %c0_16 = arith.constant 0 : index
      %15 = vector.load %arg5[%c0_14, %c0_15, %c0_16] : memref<1x8x1xf32, #tpu.memory_space<vmem>>, vector<1x8x1xf32>
      %16 = vector.shape_cast %15 : vector<1x8x1xf32> to vector<8x1xf32>
      %17 = vector.broadcast %16 : vector<8x1xf32> to vector<8x144xf32>
      %18 = arith.addf %14, %17 : vector<8x144xf32>
      %cst_17 = arith.constant 0.000000e+00 : f32
      %19 = vector.broadcast %cst_17 : f32 to vector<8x144xf32>
      %20 = arith.cmpf oge, %18, %19 : vector<8x144xf32>
      %cst_18 = arith.constant 1.000000e-01 : f32
      %21 = vector.broadcast %cst_18 : f32 to vector<8x144xf32>
      %22 = arith.mulf %21, %18 : vector<8x144xf32>
      %23 = arith.select %20, %18, %22 : vector<8x144xi1>, vector<8x144xf32>
      %c0_19 = arith.constant 0 : index
      %c0_20 = arith.constant 0 : index
      %c0_21 = arith.constant 0 : index
      %24 = vector.load %arg6[%c0_19, %c0_20, %c0_21] : memref<1x8x144xf32, #tpu.memory_space<vmem>>, vector<1x8x144xf32>
      %25 = vector.shape_cast %24 : vector<1x8x144xf32> to vector<8x144xf32>
      %26 = vector.shape_cast %23 : vector<8x144xf32> to vector<1x8x144xf32>
      tpu.vector_store %arg6[%c0_19, %c0_20, %c0_21], %26 {strides = array<i32>} : memref<1x8x144xf32, #tpu.memory_space<vmem>>, vector<1x8x144xf32>,
    } else {
    }
    return
  }
  func.func @transform_0(%arg0: i32, %arg1: i32, %arg2: i32) -> (i32, i32, i32) {
    %c0_i32 = arith.constant 0 : i32
    return %arg0, %arg2, %arg1 : i32, i32, i32
  }
  func.func @transform_1(%arg0: i32, %arg1: i32, %arg2: i32) -> (i32, i32, i32) {
    %c0_i32 = arith.constant 0 : i32
    %c0_i32_0 = arith.constant 0 : i32
    return %arg0, %c0_i32, %arg2 : i32, i32, i32
  }
  func.func @transform_2(%arg0: i32, %arg1: i32, %arg2: i32) -> (i32, i32, i32) {
    %c0_i32 = arith.constant 0 : i32
    %c0_i32_0 = arith.constant 0 : i32
    %c0_i32_1 = arith.constant 0 : i32
    return %arg0, %c0_i32, %c0_i32_0 : i32, i32, i32
  }
  func.func @transform_3(%arg0: i32, %arg1: i32, %arg2: i32) -> (i32, i32, i32) {
    %c0_i32 = arith.constant 0 : i32
    %c0_i32_0 = arith.constant 0 : i32
    return %arg0, %c0_i32, %arg1 : i32, i32, i32
  }
}

module attributes {stable_mosaic.version = 11 : i64} {
  func.func @kernel(%arg0: i32, %arg1: i32, %arg2: i32, %arg3: memref<1x216x72xbf16, #tpu.memory_space<vmem>>, %arg4: memref<1x8x216xbf16, #tpu.memory_space<vmem>>, %arg5: memref<1x8x1xf32, #tpu.memory_space<vmem>>, %arg6: memref<1x8x72xf32, #tpu.memory_space<vmem>>, %arg7: memref<8x72xf32, #tpu.memory_space<vmem>>) attributes {dimension_semantics = [#tpu.dimension_semantics<parallel>, #tpu.dimension_semantics<parallel>, #tpu.dimension_semantics<arbitrary>], iteration_bounds = array<i64: 1, 1, 1>, scalar_prefetch = 0 : i64, scratch_operands = 1 : i64, tpu.core_type = #tpu.core_type<tc>, window_params = [{transform_indices = @transform_0, window_bounds = array<i64: 1, 216, 72>}, {transform_indices = @transform_1, window_bounds = array<i64: 1, 8, 216>}, {transform_indices = @transform_2, window_bounds = array<i64: 1, 8, 1>}, {transform_indices = @transform_3, window_bounds = array<i64: 1, 8, 72>}]} {
    %c0_i32 = arith.constant 0 : i32
    %0 = arith.cmpi eq, %arg2, %c0_i32 : i32
    %1 = arith.extui %0 : i1 to i32
    %c0_i32_0 = arith.constant 0 : i32
    %2 = arith.cmpi ne, %1, %c0_i32_0 : i32
    scf.if %2 {
      %cst_12 = arith.constant 0.000000e+00 : f32
      %14 = vector.broadcast %cst_12 : f32 to vector<8x72xf32>
      %c0_13 = arith.constant 0 : index
      %c0_14 = arith.constant 0 : index
      %15 = vector.load %arg7[%c0_13, %c0_14] : memref<8x72xf32, #tpu.memory_space<vmem>>, vector<8x72xf32>
      tpu.vector_store %arg7[%c0_13, %c0_14], %14 {strides = array<i32>} : memref<8x72xf32, #tpu.memory_space<vmem>>, vector<8x72xf32>,
    } else {
    }
    %c0 = arith.constant 0 : index
    %c0_1 = arith.constant 0 : index
    %3 = vector.load %arg7[%c0, %c0_1] : memref<8x72xf32, #tpu.memory_space<vmem>>, vector<8x72xf32>
    %c0_2 = arith.constant 0 : index
    %c0_3 = arith.constant 0 : index
    %c0_4 = arith.constant 0 : index
    %4 = vector.load %arg4[%c0_2, %c0_3, %c0_4] : memref<1x8x216xbf16, #tpu.memory_space<vmem>>, vector<1x8x216xbf16>
    %5 = vector.shape_cast %4 : vector<1x8x216xbf16> to vector<8x216xbf16>
    %c0_5 = arith.constant 0 : index
    %c0_6 = arith.constant 0 : index
    %c0_7 = arith.constant 0 : index
    %6 = vector.load %arg3[%c0_5, %c0_6, %c0_7] : memref<1x216x72xbf16, #tpu.memory_space<vmem>>, vector<1x216x72xbf16>
    %7 = vector.shape_cast %6 : vector<1x216x72xbf16> to vector<216x72xbf16>
    %cst = arith.constant dense<0.000000e+00> : vector<8x72xf32>
    %8 = tpu.matmul %5, %7, %cst {dimension_numbers = #tpu.dot_dimension_numbers<[1], [0], [0], [1], [0, 0, 1, 1], [], []>} : vector<8x216xbf16>, vector<216x72xbf16>, vector<8x72xf32> -> vector<8x72xf32>
    %9 = arith.addf %3, %8 : vector<8x72xf32>
    %c0_8 = arith.constant 0 : index
    %c0_9 = arith.constant 0 : index
    %10 = vector.load %arg7[%c0_8, %c0_9] : memref<8x72xf32, #tpu.memory_space<vmem>>, vector<8x72xf32>
    tpu.vector_store %arg7[%c0_8, %c0_9], %9 {strides = array<i32>} : memref<8x72xf32, #tpu.memory_space<vmem>>, vector<8x72xf32>,
    %c0_i32_10 = arith.constant 0 : i32
    %11 = arith.cmpi eq, %arg2, %c0_i32_10 : i32
    %12 = arith.extui %11 : i1 to i32
    %c0_i32_11 = arith.constant 0 : i32
    %13 = arith.cmpi ne, %12, %c0_i32_11 : i32
    scf.if %13 {
      %c0_12 = arith.constant 0 : index
      %c0_13 = arith.constant 0 : index
      %14 = vector.load %arg7[%c0_12, %c0_13] : memref<8x72xf32, #tpu.memory_space<vmem>>, vector<8x72xf32>
      %c0_14 = arith.constant 0 : index
      %c0_15 = arith.constant 0 : index
      %c0_16 = arith.constant 0 : index
      %15 = vector.load %arg5[%c0_14, %c0_15, %c0_16] : memref<1x8x1xf32, #tpu.memory_space<vmem>>, vector<1x8x1xf32>
      %16 = vector.shape_cast %15 : vector<1x8x1xf32> to vector<8x1xf32>
      %17 = vector.broadcast %16 : vector<8x1xf32> to vector<8x72xf32>
      %18 = arith.addf %14, %17 : vector<8x72xf32>
      %cst_17 = arith.constant 0.000000e+00 : f32
      %19 = vector.broadcast %cst_17 : f32 to vector<8x72xf32>
      %20 = arith.cmpf oge, %18, %19 : vector<8x72xf32>
      %cst_18 = arith.constant 1.000000e-01 : f32
      %21 = vector.broadcast %cst_18 : f32 to vector<8x72xf32>
      %22 = arith.mulf %21, %18 : vector<8x72xf32>
      %23 = arith.select %20, %18, %22 : vector<8x72xi1>, vector<8x72xf32>
      %c0_19 = arith.constant 0 : index
      %c0_20 = arith.constant 0 : index
      %c0_21 = arith.constant 0 : index
      %24 = vector.load %arg6[%c0_19, %c0_20, %c0_21] : memref<1x8x72xf32, #tpu.memory_space<vmem>>, vector<1x8x72xf32>
      %25 = vector.shape_cast %24 : vector<1x8x72xf32> to vector<8x72xf32>
      %26 = vector.shape_cast %23 : vector<8x72xf32> to vector<1x8x72xf32>
      tpu.vector_store %arg6[%c0_19, %c0_20, %c0_21], %26 {strides = array<i32>} : memref<1x8x72xf32, #tpu.memory_space<vmem>>, vector<1x8x72xf32>,
    } else {
    }
    return
  }
  func.func @transform_0(%arg0: i32, %arg1: i32, %arg2: i32) -> (i32, i32, i32) {
    %c0_i32 = arith.constant 0 : i32
    return %arg0, %arg2, %arg1 : i32, i32, i32
  }
  func.func @transform_1(%arg0: i32, %arg1: i32, %arg2: i32) -> (i32, i32, i32) {
    %c0_i32 = arith.constant 0 : i32
    %c0_i32_0 = arith.constant 0 : i32
    return %arg0, %c0_i32, %arg2 : i32, i32, i32
  }
  func.func @transform_2(%arg0: i32, %arg1: i32, %arg2: i32) -> (i32, i32, i32) {
    %c0_i32 = arith.constant 0 : i32
    %c0_i32_0 = arith.constant 0 : i32
    %c0_i32_1 = arith.constant 0 : i32
    return %arg0, %c0_i32, %c0_i32_0 : i32, i32, i32
  }
  func.func @transform_3(%arg0: i32, %arg1: i32, %arg2: i32) -> (i32, i32, i32) {
    %c0_i32 = arith.constant 0 : i32
    %c0_i32_0 = arith.constant 0 : i32
    return %arg0, %c0_i32, %arg1 : i32, i32, i32
  }
}

module attributes {stable_mosaic.version = 11 : i64} {
  func.func @kernel(%arg0: i32, %arg1: i32, %arg2: i32, %arg3: memref<1x72x72xbf16, #tpu.memory_space<vmem>>, %arg4: memref<1x1x72xbf16, #tpu.memory_space<vmem>>, %arg5: memref<1x1x1xf32, #tpu.memory_space<vmem>>, %arg6: memref<1x1x72xf32, #tpu.memory_space<vmem>>, %arg7: memref<1x72xf32, #tpu.memory_space<vmem>>) attributes {dimension_semantics = [#tpu.dimension_semantics<parallel>, #tpu.dimension_semantics<parallel>, #tpu.dimension_semantics<arbitrary>], iteration_bounds = array<i64: 1, 1, 1>, scalar_prefetch = 0 : i64, scratch_operands = 1 : i64, tpu.core_type = #tpu.core_type<tc>, window_params = [{transform_indices = @transform_0, window_bounds = array<i64: 1, 72, 72>}, {transform_indices = @transform_1, window_bounds = array<i64: 1, 1, 72>}, {transform_indices = @transform_2, window_bounds = array<i64: 1, 1, 1>}, {transform_indices = @transform_3, window_bounds = array<i64: 1, 1, 72>}]} {
    %c0_i32 = arith.constant 0 : i32
    %0 = arith.cmpi eq, %arg2, %c0_i32 : i32
    %1 = arith.extui %0 : i1 to i32
    %c0_i32_0 = arith.constant 0 : i32
    %2 = arith.cmpi ne, %1, %c0_i32_0 : i32
    scf.if %2 {
      %cst_12 = arith.constant 0.000000e+00 : f32
      %14 = vector.broadcast %cst_12 : f32 to vector<1x72xf32>
      %c0_13 = arith.constant 0 : index
      %c0_14 = arith.constant 0 : index
      %15 = vector.load %arg7[%c0_13, %c0_14] : memref<1x72xf32, #tpu.memory_space<vmem>>, vector<1x72xf32>
      tpu.vector_store %arg7[%c0_13, %c0_14], %14 {strides = array<i32>} : memref<1x72xf32, #tpu.memory_space<vmem>>, vector<1x72xf32>,
    } else {
    }
    %c0 = arith.constant 0 : index
    %c0_1 = arith.constant 0 : index
    %3 = vector.load %arg7[%c0, %c0_1] : memref<1x72xf32, #tpu.memory_space<vmem>>, vector<1x72xf32>
    %c0_2 = arith.constant 0 : index
    %c0_3 = arith.constant 0 : index
    %c0_4 = arith.constant 0 : index
    %4 = vector.load %arg4[%c0_2, %c0_3, %c0_4] : memref<1x1x72xbf16, #tpu.memory_space<vmem>>, vector<1x1x72xbf16>
    %5 = vector.shape_cast %4 : vector<1x1x72xbf16> to vector<1x72xbf16>
    %c0_5 = arith.constant 0 : index
    %c0_6 = arith.constant 0 : index
    %c0_7 = arith.constant 0 : index
    %6 = vector.load %arg3[%c0_5, %c0_6, %c0_7] : memref<1x72x72xbf16, #tpu.memory_space<vmem>>, vector<1x72x72xbf16>
    %7 = vector.shape_cast %6 : vector<1x72x72xbf16> to vector<72x72xbf16>
    %cst = arith.constant dense<0.000000e+00> : vector<1x72xf32>
    %8 = tpu.matmul %5, %7, %cst {dimension_numbers = #tpu.dot_dimension_numbers<[1], [0], [0], [1], [0, 0, 1, 1], [], []>} : vector<1x72xbf16>, vector<72x72xbf16>, vector<1x72xf32> -> vector<1x72xf32>
    %9 = arith.addf %3, %8 : vector<1x72xf32>
    %c0_8 = arith.constant 0 : index
    %c0_9 = arith.constant 0 : index
    %10 = vector.load %arg7[%c0_8, %c0_9] : memref<1x72xf32, #tpu.memory_space<vmem>>, vector<1x72xf32>
    tpu.vector_store %arg7[%c0_8, %c0_9], %9 {strides = array<i32>} : memref<1x72xf32, #tpu.memory_space<vmem>>, vector<1x72xf32>,
    %c0_i32_10 = arith.constant 0 : i32
    %11 = arith.cmpi eq, %arg2, %c0_i32_10 : i32
    %12 = arith.extui %11 : i1 to i32
    %c0_i32_11 = arith.constant 0 : i32
    %13 = arith.cmpi ne, %12, %c0_i32_11 : i32
    scf.if %13 {
      %c0_12 = arith.constant 0 : index
      %c0_13 = arith.constant 0 : index
      %14 = vector.load %arg7[%c0_12, %c0_13] : memref<1x72xf32, #tpu.memory_space<vmem>>, vector<1x72xf32>
      %c0_14 = arith.constant 0 : index
      %c0_15 = arith.constant 0 : index
      %c0_16 = arith.constant 0 : index
      %15 = vector.load %arg5[%c0_14, %c0_15, %c0_16] : memref<1x1x1xf32, #tpu.memory_space<vmem>>, vector<1x1x1xf32>
      %16 = vector.shape_cast %15 : vector<1x1x1xf32> to vector<1x1xf32>
      %17 = vector.broadcast %16 : vector<1x1xf32> to vector<1x72xf32>
      %18 = arith.addf %14, %17 : vector<1x72xf32>
      %c0_17 = arith.constant 0 : index
      %c0_18 = arith.constant 0 : index
      %c0_19 = arith.constant 0 : index
      %19 = vector.load %arg6[%c0_17, %c0_18, %c0_19] : memref<1x1x72xf32, #tpu.memory_space<vmem>>, vector<1x1x72xf32>
      %20 = vector.shape_cast %19 : vector<1x1x72xf32> to vector<1x72xf32>
      %21 = vector.shape_cast %18 : vector<1x72xf32> to vector<1x1x72xf32>
      tpu.vector_store %arg6[%c0_17, %c0_18, %c0_19], %21 {strides = array<i32>} : memref<1x1x72xf32, #tpu.memory_space<vmem>>, vector<1x1x72xf32>,
    } else {
    }
    return
  }
  func.func @transform_0(%arg0: i32, %arg1: i32, %arg2: i32) -> (i32, i32, i32) {
    %c0_i32 = arith.constant 0 : i32
    return %arg0, %arg2, %arg1 : i32, i32, i32
  }
  func.func @transform_1(%arg0: i32, %arg1: i32, %arg2: i32) -> (i32, i32, i32) {
    %c0_i32 = arith.constant 0 : i32
    %c0_i32_0 = arith.constant 0 : i32
    return %arg0, %c0_i32, %arg2 : i32, i32, i32
  }
  func.func @transform_2(%arg0: i32, %arg1: i32, %arg2: i32) -> (i32, i32, i32) {
    %c0_i32 = arith.constant 0 : i32
    %c0_i32_0 = arith.constant 0 : i32
    %c0_i32_1 = arith.constant 0 : i32
    return %arg0, %c0_i32, %c0_i32_0 : i32, i32, i32
  }
  func.func @transform_3(%arg0: i32, %arg1: i32, %arg2: i32) -> (i32, i32, i32) {
    %c0_i32 = arith.constant 0 : i32
    %c0_i32_0 = arith.constant 0 : i32
    return %arg0, %c0_i32, %arg1 : i32, i32, i32
  }
}

module attributes {stable_mosaic.version = 11 : i64} {
  func.func @kernel(%arg0: i32, %arg1: i32, %arg2: i32, %arg3: memref<1x72x72xbf16, #tpu.memory_space<vmem>>, %arg4: memref<1x8x72xbf16, #tpu.memory_space<vmem>>, %arg5: memref<1x8x1xf32, #tpu.memory_space<vmem>>, %arg6: memref<1x8x72xf32, #tpu.memory_space<vmem>>, %arg7: memref<8x72xf32, #tpu.memory_space<vmem>>) attributes {dimension_semantics = [#tpu.dimension_semantics<parallel>, #tpu.dimension_semantics<parallel>, #tpu.dimension_semantics<arbitrary>], iteration_bounds = array<i64: 1, 1, 1>, scalar_prefetch = 0 : i64, scratch_operands = 1 : i64, tpu.core_type = #tpu.core_type<tc>, window_params = [{transform_indices = @transform_0, window_bounds = array<i64: 1, 72, 72>}, {transform_indices = @transform_1, window_bounds = array<i64: 1, 8, 72>}, {transform_indices = @transform_2, window_bounds = array<i64: 1, 8, 1>}, {transform_indices = @transform_3, window_bounds = array<i64: 1, 8, 72>}]} {
    %c0_i32 = arith.constant 0 : i32
    %0 = arith.cmpi eq, %arg2, %c0_i32 : i32
    %1 = arith.extui %0 : i1 to i32
    %c0_i32_0 = arith.constant 0 : i32
    %2 = arith.cmpi ne, %1, %c0_i32_0 : i32
    scf.if %2 {
      %cst_12 = arith.constant 0.000000e+00 : f32
      %14 = vector.broadcast %cst_12 : f32 to vector<8x72xf32>
      %c0_13 = arith.constant 0 : index
      %c0_14 = arith.constant 0 : index
      %15 = vector.load %arg7[%c0_13, %c0_14] : memref<8x72xf32, #tpu.memory_space<vmem>>, vector<8x72xf32>
      tpu.vector_store %arg7[%c0_13, %c0_14], %14 {strides = array<i32>} : memref<8x72xf32, #tpu.memory_space<vmem>>, vector<8x72xf32>,
    } else {
    }
    %c0 = arith.constant 0 : index
    %c0_1 = arith.constant 0 : index
    %3 = vector.load %arg7[%c0, %c0_1] : memref<8x72xf32, #tpu.memory_space<vmem>>, vector<8x72xf32>
    %c0_2 = arith.constant 0 : index
    %c0_3 = arith.constant 0 : index
    %c0_4 = arith.constant 0 : index
    %4 = vector.load %arg4[%c0_2, %c0_3, %c0_4] : memref<1x8x72xbf16, #tpu.memory_space<vmem>>, vector<1x8x72xbf16>
    %5 = vector.shape_cast %4 : vector<1x8x72xbf16> to vector<8x72xbf16>
    %c0_5 = arith.constant 0 : index
    %c0_6 = arith.constant 0 : index
    %c0_7 = arith.constant 0 : index
    %6 = vector.load %arg3[%c0_5, %c0_6, %c0_7] : memref<1x72x72xbf16, #tpu.memory_space<vmem>>, vector<1x72x72xbf16>
    %7 = vector.shape_cast %6 : vector<1x72x72xbf16> to vector<72x72xbf16>
    %cst = arith.constant dense<0.000000e+00> : vector<8x72xf32>
    %8 = tpu.matmul %5, %7, %cst {dimension_numbers = #tpu.dot_dimension_numbers<[1], [0], [0], [1], [0, 0, 1, 1], [], []>} : vector<8x72xbf16>, vector<72x72xbf16>, vector<8x72xf32> -> vector<8x72xf32>
    %9 = arith.addf %3, %8 : vector<8x72xf32>
    %c0_8 = arith.constant 0 : index
    %c0_9 = arith.constant 0 : index
    %10 = vector.load %arg7[%c0_8, %c0_9] : memref<8x72xf32, #tpu.memory_space<vmem>>, vector<8x72xf32>
    tpu.vector_store %arg7[%c0_8, %c0_9], %9 {strides = array<i32>} : memref<8x72xf32, #tpu.memory_space<vmem>>, vector<8x72xf32>,
    %c0_i32_10 = arith.constant 0 : i32
    %11 = arith.cmpi eq, %arg2, %c0_i32_10 : i32
    %12 = arith.extui %11 : i1 to i32
    %c0_i32_11 = arith.constant 0 : i32
    %13 = arith.cmpi ne, %12, %c0_i32_11 : i32
    scf.if %13 {
      %c0_12 = arith.constant 0 : index
      %c0_13 = arith.constant 0 : index
      %14 = vector.load %arg7[%c0_12, %c0_13] : memref<8x72xf32, #tpu.memory_space<vmem>>, vector<8x72xf32>
      %c0_14 = arith.constant 0 : index
      %c0_15 = arith.constant 0 : index
      %c0_16 = arith.constant 0 : index
      %15 = vector.load %arg5[%c0_14, %c0_15, %c0_16] : memref<1x8x1xf32, #tpu.memory_space<vmem>>, vector<1x8x1xf32>
      %16 = vector.shape_cast %15 : vector<1x8x1xf32> to vector<8x1xf32>
      %17 = vector.broadcast %16 : vector<8x1xf32> to vector<8x72xf32>
      %18 = arith.addf %14, %17 : vector<8x72xf32>
      %cst_17 = arith.constant 0.000000e+00 : f32
      %19 = vector.broadcast %cst_17 : f32 to vector<8x72xf32>
      %20 = arith.cmpf oge, %18, %19 : vector<8x72xf32>
      %cst_18 = arith.constant 1.000000e-01 : f32
      %21 = vector.broadcast %cst_18 : f32 to vector<8x72xf32>
      %22 = arith.mulf %21, %18 : vector<8x72xf32>
      %23 = arith.select %20, %18, %22 : vector<8x72xi1>, vector<8x72xf32>
      %c0_19 = arith.constant 0 : index
      %c0_20 = arith.constant 0 : index
      %c0_21 = arith.constant 0 : index
      %24 = vector.load %arg6[%c0_19, %c0_20, %c0_21] : memref<1x8x72xf32, #tpu.memory_space<vmem>>, vector<1x8x72xf32>
      %25 = vector.shape_cast %24 : vector<1x8x72xf32> to vector<8x72xf32>
      %26 = vector.shape_cast %23 : vector<8x72xf32> to vector<1x8x72xf32>
      tpu.vector_store %arg6[%c0_19, %c0_20, %c0_21], %26 {strides = array<i32>} : memref<1x8x72xf32, #tpu.memory_space<vmem>>, vector<1x8x72xf32>,
    } else {
    }
    return
  }
  func.func @transform_0(%arg0: i32, %arg1: i32, %arg2: i32) -> (i32, i32, i32) {
    %c0_i32 = arith.constant 0 : i32
    return %arg0, %arg2, %arg1 : i32, i32, i32
  }
  func.func @transform_1(%arg0: i32, %arg1: i32, %arg2: i32) -> (i32, i32, i32) {
    %c0_i32 = arith.constant 0 : i32
    %c0_i32_0 = arith.constant 0 : i32
    return %arg0, %c0_i32, %arg2 : i32, i32, i32
  }
  func.func @transform_2(%arg0: i32, %arg1: i32, %arg2: i32) -> (i32, i32, i32) {
    %c0_i32 = arith.constant 0 : i32
    %c0_i32_0 = arith.constant 0 : i32
    %c0_i32_1 = arith.constant 0 : i32
    return %arg0, %c0_i32, %c0_i32_0 : i32, i32, i32
  }
  func.func @transform_3(%arg0: i32, %arg1: i32, %arg2: i32) -> (i32, i32, i32) {
    %c0_i32 = arith.constant 0 : i32
    %c0_i32_0 = arith.constant 0 : i32
    return %arg0, %c0_i32, %arg1 : i32, i32, i32
  }
}

</mosaic_0001>

<bundles_post_ra>
// kernel: discriminator_cqt_forward.7
= control target key start
LH: loop header
LB: loop body
LE: loop exit
PB: predicated region body
PF: predicated region fallthrough
CT: control target
= control target key end

     0   :  { %vm19_vm0 = vcmask 293888   ;;  %v218_v0 = vmov 0.0   ;;  %vm219_vm1 = vmmov 0   ;;  %v220_v2 = vmov 0   ;;  %s286_s0 = inlined_call_operand.vmem [shape: bf16[1,128,36], index: 0, kind: input, shape index: {}]   ;;  %s287_s2 = inlined_call_operand.vmem [shape: f32[1,16,1], index: 2, kind: input, shape index: {}]   ;;  %s288_s1 = inlined_call_operand.vmem [shape: bf16[1,16,128], index: 1, kind: input, shape index: {}]   ;;  %s289_s3 = inlined_call_operand.vmem [shape: f32[1,16,36], index: 3, kind: output, shape index: {}]  }
   0x1   :  { %185 = vmatprep.subr.bf16.mxu0 %v218_v0  ;;  %v209_v1 = vld [vmem:[%s286_s0] sm:$0xff]   ;;  %201 = vmatprep.mubr.msk.bf16.mxu0 %vm219_vm1, %v218_v0  ;;  %20 = vst.msk [vmem:[#allocation2] sm:$0xff] %vm19_vm0, %v218_v0  ;;  %21 = vst.msk [vmem:[#allocation2 + $0x8] sm:$0xff] %vm19_vm0, %v218_v0  ;;  %v210_v3 = vld [vmem:[%s286_s0 + $0x8] sm:$0xff]  }
   0x2   :  { %208 = vset.pattern.permute.xlu0 %v220_v2  ;;  %186 = vmatpush3.bf16.msra.mxu0 %v209_v1  ;;  %v211_v4 = vld [vmem:[%s286_s0 + $0x10] sm:$0xff]   ;;  %v147_v5 = vld [vmem:[%s287_s2] sm:$0xff]  ;;  %v212_v6 = vld [vmem:[%s286_s0 + $0x18] sm:$0xff]  }
   0x3   :  { %187 = vmatprep.subr.bf16.mxu0 %v218_v0  ;;  %151 = vperm.xlu0 %208, %v147_v5   ;;  %v148_v7 = vld [vmem:[%s287_s2 + $0x8] sm:$0xff]  ;;  %v213_v8 = vld [vmem:[%s286_s0 + $0x20] sm:$0xff]   ;;  %v215_v10 = vld [vmem:[%s286_s0 + $0x30] sm:$0xff]  }
   0x4   :  { %v214_v9 = vld [vmem:[%s286_s0 + $0x28] sm:$0xff]   ;;  %v216_v11 = vld [vmem:[%s286_s0 + $0x38] sm:$0xff]   ;;  %v217_v12 = vld [vmem:[%s288_s1] sm:$0xff]  }
   0x6   :  { %188 = vmatpush3.bf16.msra.mxu0 %v210_v3 }
   0x7   :  { %189 = vmatprep.subr.bf16.mxu0 %v218_v0  ;;  %156 = vperm.xlu0 %208, %v148_v7  }
   0x8   :  { %v22_v13 = vld [vmem:[#allocation2] sm:$0xff]  ;;  %v23_v15 = vld [vmem:[#allocation2 + $0x8] sm:$0xff] }
   0xa   :  { %190 = vmatpush3.bf16.msra.mxu0 %v211_v4 }
   0xb   :  { %191 = vmatprep.subr.bf16.mxu0 %v218_v0 }
   0xe   :  { %192 = vmatpush3.bf16.msra.mxu0 %v212_v6 }
   0xf   :  { %193 = vmatprep.subr.bf16.mxu0 %v218_v0 }
  0x12   :  { %194 = vmatpush3.bf16.msra.mxu0 %v213_v8 }
  0x13   :  { %195 = vmatprep.subr.bf16.mxu0 %v218_v0 }
  0x16   :  { %196 = vmatpush3.bf16.msra.mxu0 %v214_v9 }
  0x17   :  { %197 = vmatprep.subr.bf16.mxu0 %v218_v0 }
  0x1a   :  { %198 = vmatpush3.bf16.msra.mxu0 %v215_v10 }
  0x1b   :  { %199 = vmatprep.subr.bf16.mxu0 %v218_v0 }
  0x1e   :  { %200 = vmatpush3.bf16.msra.mxu0 %v216_v11 }
  0x21   :  { %202 = vmatmul.mubr.bf16.vlgmr.msra.gmra.mrb[0].mxu0 %v217_v12 }
  0x82   :  { %v152_v21 = vpop.permute.xlu0 %151 }
  0x86   :  { %v157_v24 = vpop.permute.xlu0 %156 }
  0xf4   :  { %v130_v14 = vpop.f32.mrb[0].mxu0 }
  0xf5   :  { %v137_v16 = vadd.f32 %v130_v14, %v22_v13  ;;  %v203_v17 = vpop.f32.mrb[1].mxu0 }
  0xf6   :  { %v133_v18 = vpop.f32.mrb[2].mxu0 }
  0xf7   :  { %140 = vst.msk [vmem:[#allocation2] sm:$0xff] %vm19_vm0, %v137_v16  ;;  %v138_v19 = vadd.f32 %v133_v18, %v23_v15  ;;  %v204_v20 = vpop.f32.mrb[3].mxu0 }
  0xf9   :  { %141 = vst.msk [vmem:[#allocation2 + $0x8] sm:$0xff] %vm19_vm0, %v138_v19 }
  0xfe   :  { %v145_v22 = vld [vmem:[#allocation2] sm:$0xff] }
  0xff   :  { %v159_v23 = vadd.f32 %v152_v21, %v145_v22 }
 0x100   :  { %v146_v25 = vld [vmem:[#allocation2 + $0x8] sm:$0xff] }
 0x101   :  { %161 = vst.msk [vmem:[%s289_s3] sm:$0xff] %vm19_vm0, %v159_v23  ;;  %v160_v26 = vadd.f32 %v157_v24, %v146_v25 }
 0x103   :  { %162 = vst.msk [vmem:[%s289_s3 + $0x8] sm:$0xff] %vm19_vm0, %v160_v26 }

// kernel: discriminator_cqt_forward.8
= control target key start
LH: loop header
LB: loop body
LE: loop exit
PB: predicated region body
PF: predicated region fallthrough
CT: control target
= control target key end

     0   :  { %s649_s12 = smov 0   ;;  %s651_s13 = smov 0   ;;  %s704_s0 = inlined_call_operand.vmem [shape: bf16[2,56,144], index: 0, kind: input, shape index: {}]   ;;  %s705_s1 = inlined_call_operand.vmem [shape: bf16[2,2,56], index: 1, kind: input, shape index: {}]   ;;  %s706_s2 = inlined_call_operand.vmem [shape: f32[2,2,1], index: 2, kind: input, shape index: {}]   ;;  %s707_s3 = inlined_call_operand.vmem [shape: f32[2,2,144], index: 3, kind: output, shape index: {}]  }
   0x1   :  { %s653_s14 = smov 0  }
   0x2 LB: > { %s32_s15 = sadd.s32 1, %s619_s13  ;;  %p542_p0 = scmp.ge.s32.totalorder %s623_s14, 1  ;;  %s623_s14 = sphi %s653_s14, %s13_s14   ;;  %s619_s13 = sphi %s651_s13, %s711_s13   ;;  %s615_s12 = sphi %s649_s12, %s710_s12  }
   0x3   : > { %p34_p1 = scmp.ge.s32.totalorder %s32_s15, 2  ;;  %p195_p2 = scmp.lt.s32.totalorder %s623_s14, 3 }
   0x5   : > { %s713_s15 = smov (%p34_p1, %s32_s15), 0  ;;  %p196_p3 = pnand %p542_p0, %p195_p2 }
   0x6   : > { %p244_p4 = scmp.lt.s32.totalorder (!%p196_p3), %s615_s12, 1  ;;  %v625_v0 = vmov (!%p196_p3), 0   ;;  %vm335_vm0 = vcmask (!%p196_p3), 1043456   ;;  %vm331_vm1 = vcmask (!%p196_p3), 457728   ;;  %vm283_vm2 = vcmask (!%p196_p3), 1041408  }
   0x7   : > { %199 = sbr.rel (%p196_p3) target bundleno = 265 (0x109), region = 32  ;;  %374 = vmatprep.mubr.bf16.mxu0 (!%p196_p3), %v625_v0  ;;  %589 = vset.pattern.permute.xlu0 (!%p196_p3), %v625_v0  ;;  %vm284_vm3 = vcmask (!%p196_p3), 125954   ;;  %v626_v14 = vmov (!%p196_p3), 0.0   ;;  %v627_v15 = vmov (!%p196_p3), 1983009808   ;;  %v389_v17 = vlaneseq (!%p196_p3) }
   0x8   : > { %vm681_vm4 = vmor (!%p196_p3), %vm284_vm3, %vm283_vm2  ;;  %v387_v16 = vunpack.c.l.s4 (!%p196_p3), %v627_v15  ;;  %v628_v22 = vmov (!%p196_p3), 269488144  }
   0x9   : > { %286 = vst.msk [vmem:[#allocation2] sm:$0xf] (!%p196_p3), %vm681_vm4, %v626_v14  ;;  %v390_v19 = vshrl.u32 (!%p196_p3), %v389_v17, 7  ;;  %v409_v23 = vunpack.c.l.s4 (!%p196_p3), %v628_v22 }
   0xa   : > { %v388_v18 = vunpack.c.0.s8 (!%p196_p3), %v387_v16 }
   0xb   : > { %v410_v30 = vunpack.c.0.s8 (!%p196_p3), %v409_v23 }
   0xc   : > { %v391_v21 = vsub.s32 (!%p196_p3), %v388_v18, %v390_v19 }
   0xd   : > { %v413_v32 = vsub.s32 (!%p196_p3), %v410_v30, %v390_v19 }
   0xe   : > { %s715_s12 = smov (!%p244_p4, %s615_s12), 1 }
   0xf   : > { %s560_s16 = smul.u32 56, %s715_s12  ;;  %s544_s17 = sshll.u32 %s715_s12, 1 }
  0x10   : > { %s267_s23 = scalar_lea.vmem %s706_s2, %s544_s17  ;;  %s263_s26 = scalar_lea.vmem %s705_s1, %s715_s12  ;;  %v287_v27 = vld [vmem:[#allocation2] sm:$0xf] }
  0x11   : > { %s255_s20 = scalar_lea.vmem %s704_s0, %s560_s16  ;;  %v403_v6 = vld [vmem:[%s267_s23] sm:$0x3]  ;;  %s559_s27 = sshll.u32 %s715_s12, 2 }
  0x12   : > { %v590_v1 = vld [vmem:[%s255_s20 + $0x4] ss:$8 sps:$4 sm:$0xff]   ;;  %v592_v2 = vld [vmem:[%s255_s20] ss:$8 sps:$4 sm:$0xff]   ;;  %v593_v3 = vld [vmem:[%s255_s20 + $0x14] ss:$8 sps:$4 sm:$0xff]   ;;  %406 = vperm.xlu0 %589, %v403_v6   ;;  %s276_s30 = scalar_lea.vmem %s707_s3, %s559_s27 }
  0x13   : > { %342 = vmatprep.subr.bf16.mxu0 %v590_v1  ;;  %v595_v4 = vld [vmem:[%s255_s20 + $0x10] ss:$8 sps:$4 sm:$0xff]   ;;  %v596_v5 = vld [vmem:[%s255_s20 + $0x24] ss:$8 sps:$4 sm:$0xff]   ;;  %v598_v8 = vld [vmem:[%s255_s20 + $0x20] ss:$8 sps:$4 sm:$0xff]  }
  0x14   : > { %343 = vmatpush1.bf16.msra.mxu0 %v592_v2  ;;  %v295_v7 = vld [vmem:[%s255_s20 + $0x30] sm:$0xff]  ;;  %v288_v12 = vld [vmem:[%s263_s26] sm:$0x1] }
  0x15   : > { %344 = vmatprep.subr.bf16.mxu0 %v593_v3  ;;  %v554_v9 = vcombine.high %v295_v7, %v295_v7  ;;  %v553_v10 = vcombine.low %v295_v7, %v295_v7 }
  0x17   : > { %v337_v11 = vsel %vm335_vm0, %v553_v10, 0 }
  0x18   : > { %345 = vmatpush1.bf16.msra.mxu0 %v595_v4 }
  0x19   : > { %346 = vmatprep.subr.bf16.mxu0 %v596_v5 }
  0x1c   : > { %347 = vmatpush1.bf16.msra.mxu0 %v598_v8 }
  0x1d   : > { %555 = vmatprep.subr.msk.bf16.mxu0 %vm335_vm0, %v554_v9 }
  0x20   : > { %349 = vmatpush1.bf16.msra.mxu0 %v337_v11 }
  0x23   : > { %556 = vmatmul.mubr.msk.bf16.vlgmr.msra.gmra.mrb[0].mxu0 %vm331_vm1, %v288_v12 }
  0x91   : > { %v407_v33 = vpop.permute.xlu0 %406 }
  0x92   : > { %v414_v34 = vrot.slane %v407_v33, %v413_v32 }
  0xf6   : > { %v376_v20 = vpop.f32.mrb[0].mxu0 }
  0xf7   : > { %v378_v24 = vpop.f32.mrb[1].mxu0 }
  0xf8   : > { %v385_v25 = vcombine.low %v376_v20, %v378_v24  ;;  %v380_v26 = vpop.f32.mrb[2].mxu0 }
  0xf9   : > { %v381_v28 = vpop.f32.mrb[3].mxu0 }
  0xfa   : > { %v392_v29 = vrot.slane %v385_v25, %v391_v21 }
  0xfc   : > { %v394_v31 = vadd.f32 %v392_v29, %v287_v27 }
  0xfe   : > { %398 = vst.msk [vmem:[#allocation2] sm:$0xf] %vm681_vm4, %v394_v31 }
 0x105   : > { %v402_v35 = vld [vmem:[#allocation2] sm:$0xf] }
 0x106   : > { %v416_v36 = vadd.f32 %v414_v34, %v402_v35 }
 0x108   : > { %417 = vst.msk [vmem:[%s276_s30] sm:$0xf] %vm681_vm4, %v416_v36 }
 0x109 PF: > { %s13_s14 = sadd.s32 1, %s623_s14   ;;  %s710_s12 = smov %s619_s13 }
 0x10a   : > { %p10_p5 = scmp.ge.s32.totalorder %s13_s14, 4   ;;  %s711_s13 = smov %s713_s15 }
 0x10c   :  { %12 = sbr.rel (!%p10_p5) target bundleno = 2 (0x2), region = 76 }

// kernel: squeeze.7
= control target key start
LH: loop header
LB: loop body
LE: loop exit
PB: predicated region body
PF: predicated region fallthrough
CT: control target
= control target key end

     0   :  { %s57_s6 = smov 3  ;;  %s60_s7 = smov 12  ;;  %vm62_vm0 = vcmask 1043458   ;;  %vm66_vm1 = vcmask 1046532   ;;  %vm70_vm2 = vcmask 1047559   ;;  %vm120_vm3 = vcmask 1047556   ;;  %s1527_s0 = inlined_call_operand.vmem [shape: f32[1,8,288], index: 0, kind: input, shape index: {}]   ;;  %s1528_s1 = inlined_call_operand.vmem [shape: f32[8,4,9,8], index: 1, kind: output, shape index: {}]  }
   0x1   :  { %v58_v0 = vld [vmem:[%s1527_s0] ss:$16 sm:%s57_s6]   ;;  %v576_v1 = vld [vmem:[%s1527_s0 + $0x16] ss:$-7 sm:%s60_s7]   ;;  %s111_s12 = smov 3  ;;  %s114_s17 = smov 12 }
   0x2   :  { %v63_v2 = vsel %vm62_vm0, %v576_v1, %v58_v0  ;;  %v577_v3 = vld.sshfl [vmem:[%s1527_s0 + $0x2] sm:$0xff pattern:$0x7fffff]   ;;  %v578_v4 = vld [vmem:[%s1527_s0 + $0xb] sm:$0x80]   ;;  %s84_s22 = smov 3 }
   0x3   :  { %v67_v5 = vsel %vm66_vm1, %v577_v3, %v63_v2  ;;  %v591_v6 = vld [vmem:[%s1527_s0 + $0x6] ss:$16 sm:%s111_s12]   ;;  %s87_s23 = smov 12  ;;  %v593_v10 = vld.sshfl [vmem:[%s1527_s0 + $0xd] sm:$0xff pattern:$0x210aaaaa]  }
   0x4   :  { %v592_v7 = vld [vmem:[%s1527_s0 + $0x16] ss:$-5 sm:%s114_s17]   ;;  %v71_v8 = vsel %vm70_vm2, %v578_v4, %v67_v5  ;;  %s136_s28 = smov 3  ;;  %s762_s29 = smov 120   ;;  %vm140_vm4 = vcmask 1044482   ;;  %vm144_vm5 = vcmask 1047557  }
   0x5   :  { %v117_v9 = vsel %vm62_vm0, %v592_v7, %v591_v6  ;;  %v583_v11 = vld [vmem:[%s1527_s0 + $0x3] ss:$16 sm:%s84_s22]   ;;  %72 = vrot.lane.b32.xlu0 %v71_v8, %s762_s29  ;;  %v585_v14 = vld.sshfl [vmem:[%s1527_s0 + $0x5] sm:$0xff pattern:$0x6fffff]   ;;  %vm178_vm6 = vcmask 1047558  }
   0x6   :  { %v121_v12 = vsel %vm120_vm3, %v593_v10, %v117_v9  ;;  %v584_v13 = vld [vmem:[%s1527_s0 + $0x16] ss:$-6 sm:%s87_s23]   ;;  %v586_v16 = vld [vmem:[%s1527_s0 + $0xe] sm:$0x80]   ;;  %s763_s21 = smov 112   ;;  %s194_s22 = smov 3 }
   0x7   :  { %122 = vrot.lane.b32.xlu1 %v121_v12, %s762_s29  ;;  %v90_v15 = vsel %vm62_vm0, %v584_v13, %v583_v11  ;;  %v599_v17 = vld [vmem:[%s1527_s0 + $0x8] ss:$-8 sm:%s136_s28]   ;;  %v601_v20 = vld.sshfl [vmem:[%s1527_s0 + $0x2] sm:$0xff pattern:$0x8ffffff]   ;;  %s764_s27 = smov 104  }
   0x8   :  { %v94_v18 = vsel %vm66_vm1, %v585_v14, %v90_v15  ;;  %v600_v19 = vld.sshfl [vmem:[%s1527_s0 + $0x1] sm:$0xff pattern:$0x8fff]   ;;  %v606_v23 = vld.sshfl [vmem:[%s1527_s0 + $0x3] sm:$0xff pattern:$0x11119f08]  }
   0x9   :  { %v98_v21 = vsel %vm70_vm2, %v586_v16, %v94_v18  ;;  %v141_v22 = vsel %vm140_vm4, %v600_v19, %v599_v17  ;;  %v607_v24 = vld.sshfl [vmem:[%s1527_s0 + $0x5] sm:$0xff pattern:$0x8eeeeee]   ;;  %v612_v26 = vld.sshfl [vmem:[%s1527_s0 + $0x6] sm:$0xff pattern:$0xfff19e08]  }
   0xa   :  { %99 = vrot.lane.b32.xlu0 %v98_v21, %s762_s29  ;;  %v145_v25 = vsel %vm144_vm5, %v601_v20, %v141_v22  ;;  %v613_v27 = vld [vmem:[%s1527_s0 + $0x10] sm:$0xc0]   ;;  %v162_v28 = vsel %vm144_vm5, %v607_v24, %v606_v23  ;;  %v619_v30 = vld [vmem:[%s1527_s0 + $0x8] ss:$-8 sm:%s194_s22]   ;;  %s765_s30 = smov 96   ;;  %s766_s4 = smov 88  }
   0xb   :  { %146 = vrot.lane.b32.xlu1 %v145_v25, %s763_s21  ;;  %v179_v29 = vsel %vm178_vm6, %v613_v27, %v612_v26  ;;  %v199_v31 = vsel %vm140_vm4, %v600_v19, %v619_v30  ;;  %v633_v33 = vld [vmem:[%s1527_s0 + $0x10] sm:$0xc0]   ;;  %v863_v35 = vld.sshfl [vmem:[%s1527_s0] sm:$0xff pattern:$0x3b2a1908]   ;;  %s767_s5 = smov 80  }
   0xc   :  { %v203_v32 = vsel %vm144_vm5, %v601_v20, %v199_v31  ;;  %v237_v34 = vsel %vm178_vm6, %v633_v33, %v612_v26  ;;  %v643_v36 = vld.sshfl [vmem:[%s1527_s0 + $0x4] sm:$0xff pattern:$0x3b2a1908]   ;;  %s768_s6 = smov 72   ;;  %s769_s7 = smov 64   ;;  %vm3_vm7 = vcmask 64512  }
   0xd   :  { %s770_s8 = smov 56   ;;  %s771_s9 = smov 48   ;;  %v2_v37 = vld [vmem:[%s1527_s0] sm:$0xff]   ;;  %v558_v38 = vld [vmem:[%s1527_s0 + $0x8] sm:$0xff]   ;;  %v567_v39 = vld [vmem:[%s1527_s0 + $0x10] sm:$0xff]  }
   0xe   :  { %163 = vrot.lane.b32.xlu0 %v162_v28, %s763_s21  ;;  %s772_s10 = smov 40   ;;  %s773_s11 = smov 32   ;;  %4 = vst.msk [vmem:[%s1528_s1] sm:$0x1] %vm3_vm7, %v2_v37   ;;  %551 = vst.msk [vmem:[%s1528_s1 + $0x3f] sm:$0x2] %vm3_vm7, %v2_v37  }
   0xf   :  { %180 = vrot.lane.b32.xlu1 %v179_v29, %s763_s21  ;;  %552 = vst.msk [vmem:[%s1528_s1 + $0x7e] sm:$0x4] %vm3_vm7, %v2_v37   ;;  %553 = vst.msk [vmem:[%s1528_s1 + $0xbd] sm:$0x8] %vm3_vm7, %v2_v37  }
  0x10   :  { %554 = vst.msk [vmem:[%s1528_s1 + $0xfc] sm:$0x10] %vm3_vm7, %v2_v37   ;;  %555 = vst.msk [vmem:[%s1528_s1 + $0x13b] sm:$0x20] %vm3_vm7, %v2_v37  }
  0x11   :  { %556 = vst.msk [vmem:[%s1528_s1 + $0x17a] sm:$0x40] %vm3_vm7, %v2_v37   ;;  %557 = vst.msk [vmem:[%s1528_s1 + $0x1b9] sm:$0x80] %vm3_vm7, %v2_v37  }
  0x12   :  { %204 = vrot.lane.b32.xlu0 %v203_v32, %s764_s27  ;;  %559 = vst.msk [vmem:[%s1528_s1 + $0x17] sm:$0x1] %vm3_vm7, %v558_v38   ;;  %560 = vst.msk [vmem:[%s1528_s1 + $0x56] sm:$0x2] %vm3_vm7, %v558_v38  }
  0x13   :  { %221 = vrot.lane.b32.xlu1 %v162_v28, %s764_s27  ;;  %561 = vst.msk [vmem:[%s1528_s1 + $0x95] sm:$0x4] %vm3_vm7, %v558_v38   ;;  %562 = vst.msk [vmem:[%s1528_s1 + $0xd4] sm:$0x8] %vm3_vm7, %v558_v38  }
  0x14   :  { %563 = vst.msk [vmem:[%s1528_s1 + $0x113] sm:$0x10] %vm3_vm7, %v558_v38   ;;  %564 = vst.msk [vmem:[%s1528_s1 + $0x152] sm:$0x20] %vm3_vm7, %v558_v38  }
  0x15   :  { %565 = vst.msk [vmem:[%s1528_s1 + $0x191] sm:$0x40] %vm3_vm7, %v558_v38   ;;  %566 = vst.msk [vmem:[%s1528_s1 + $0x1d0] sm:$0x80] %vm3_vm7, %v558_v38  }
  0x16   :  { %238 = vrot.lane.b32.xlu0 %v237_v34, %s764_s27  ;;  %568 = vst.msk [vmem:[%s1528_s1 + $0x35] sm:$0x1] %vm3_vm7, %v567_v39   ;;  %569 = vst.msk [vmem:[%s1528_s1 + $0x74] sm:$0x2] %vm3_vm7, %v567_v39  }
  0x17   :  { %252 = vrot.lane.b32.xlu1 %v863_v35, %s765_s30  ;;  %570 = vst.msk [vmem:[%s1528_s1 + $0xb3] sm:$0x4] %vm3_vm7, %v567_v39   ;;  %571 = vst.msk [vmem:[%s1528_s1 + $0xf2] sm:$0x8] %vm3_vm7, %v567_v39  }
  0x18   :  { %572 = vst.msk [vmem:[%s1528_s1 + $0x131] sm:$0x10] %vm3_vm7, %v567_v39   ;;  %573 = vst.msk [vmem:[%s1528_s1 + $0x170] sm:$0x20] %vm3_vm7, %v567_v39  }
  0x19   :  { %574 = vst.msk [vmem:[%s1528_s1 + $0x1af] sm:$0x40] %vm3_vm7, %v567_v39   ;;  %575 = vst.msk [vmem:[%s1528_s1 + $0x1ee] sm:$0x80] %vm3_vm7, %v567_v39  }
  0x1a   :  { %265 = vrot.lane.b32.xlu0 %v643_v36, %s765_s30 }
  0x1b   :  { %277 = vrot.lane.b32.xlu1 %v863_v35, %s766_s4 }
  0x1e   :  { %290 = vrot.lane.b32.xlu0 %v643_v36, %s766_s4 }
  0x1f   :  { %302 = vrot.lane.b32.xlu1 %v863_v35, %s767_s5 }
  0x22   :  { %315 = vrot.lane.b32.xlu0 %v643_v36, %s767_s5 }
  0x23   :  { %327 = vrot.lane.b32.xlu1 %v863_v35, %s768_s6 }
  0x26   :  { %340 = vrot.lane.b32.xlu0 %v643_v36, %s768_s6 }
  0x27   :  { %352 = vrot.lane.b32.xlu1 %v863_v35, %s769_s7 }
  0x2a   :  { %365 = vrot.lane.b32.xlu0 %v643_v36, %s769_s7  ;;  %s775_s7 = smov 16  }
  0x2b   :  { %377 = vrot.lane.b32.xlu1 %v863_v35, %s770_s8 }
  0x2e   :  { %390 = vrot.lane.b32.xlu0 %v643_v36, %s770_s8  ;;  %s776_s8 = smov 8  }
  0x2f   :  { %402 = vrot.lane.b32.xlu1 %v863_v35, %s771_s9 }
  0x32   :  { %415 = vrot.lane.b32.xlu0 %v643_v36, %s771_s9 }
  0x33   :  { %427 = vrot.lane.b32.xlu1 %v863_v35, %s772_s10 }
  0x36   :  { %440 = vrot.lane.b32.xlu0 %v643_v36, %s772_s10 }
  0x37   :  { %452 = vrot.lane.b32.xlu1 %v863_v35, %s773_s11 }
  0x3a   :  { %465 = vrot.lane.b32.xlu0 %v643_v36, %s773_s11  ;;  %s774_s11 = smov 24  }
  0x3b   :  { %477 = vrot.lane.b32.xlu1 %v863_v35, %s774_s11 }
  0x3e   :  { %490 = vrot.lane.b32.xlu0 %v643_v36, %s774_s11 }
  0x3f   :  { %502 = vrot.lane.b32.xlu1 %v863_v35, %s775_s7 }
  0x42   :  { %515 = vrot.lane.b32.xlu0 %v643_v36, %s775_s7 }
  0x43   :  { %527 = vrot.lane.b32.xlu1 %v863_v35, %s776_s8 }
  0x46   :  { %540 = vrot.lane.b32.xlu0 %v643_v36, %s776_s8 }
  0x77   :  { %v73_v40 = vpop.permute.xlu0 %72  }
  0x78   :  { %579 = vst.msk [vmem:[%s1528_s1 + $0x1] ss:$53 sm:$0x3] %vm3_vm7, %v73_v40   ;;  %580 = vst.msk [vmem:[%s1528_s1 - $0x3a] ss:$41 sm:$0xc] %vm3_vm7, %v73_v40  }
  0x79   :  { %581 = vst.msk [vmem:[%s1528_s1 + $0xee] ss:$-30 sm:$0x30] %vm3_vm7, %v73_v40   ;;  %582 = vst.msk [vmem:[%s1528_s1 - $0xbd] ss:$53 sm:$0xc0] %vm3_vm7, %v73_v40   ;;  %v123_v41 = vpop.permute.xlu1 %122  }
  0x7a   :  { %594 = vst.msk [vmem:[%s1528_s1 + $0x181] ss:$53 sm:$0x3] %vm3_vm7, %v123_v41   ;;  %595 = vst.msk [vmem:[%s1528_s1 - $0x3a] ss:$169 sm:$0xc] %vm3_vm7, %v123_v41  }
  0x7b   :  { %596 = vst.msk [vmem:[%s1528_s1 + $0x46e] ss:$-158 sm:$0x30] %vm3_vm7, %v123_v41   ;;  %597 = vst.msk [vmem:[%s1528_s1 + $0x192] sm:$0x40] %vm3_vm7, %v123_v41  }
  0x7c   :  { %598 = vst.msk [vmem:[%s1528_s1 + $0x1d1] sm:$0x80] %vm3_vm7, %v123_v41   ;;  %v100_v42 = vpop.permute.xlu0 %99  }
  0x7d   :  { %587 = vst.msk [vmem:[%s1528_s1 + $0xc1] ss:$53 sm:$0x3] %vm3_vm7, %v100_v42   ;;  %588 = vst.msk [vmem:[%s1528_s1 - $0x3a] ss:$105 sm:$0xc] %vm3_vm7, %v100_v42   ;;  %v147_v43 = vpop.permute.xlu1 %146  }
  0x7e   :  { %589 = vst.msk [vmem:[%s1528_s1 + $0x2ae] ss:$-94 sm:$0x30] %vm3_vm7, %v100_v42   ;;  %590 = vst.msk [vmem:[%s1528_s1 + $0x3] ss:$53 sm:$0xc0] %vm3_vm7, %v100_v42  }
  0x7f   :  { %602 = vst.msk [vmem:[%s1528_s1 + $0x20] ss:$-30 sm:$0x3] %vm3_vm7, %v147_v43   ;;  %603 = vst.msk [vmem:[%s1528_s1 - $0x1b] ss:$41 sm:$0xc] %vm3_vm7, %v147_v43  }
  0x80   :  { %604 = vst.msk [vmem:[%s1528_s1 - $0x92] ss:$53 sm:$0x30] %vm3_vm7, %v147_v43   ;;  %605 = vst.msk [vmem:[%s1528_s1 + $0x154] ss:$-30 sm:$0xc0] %vm3_vm7, %v147_v43   ;;  %v164_v44 = vpop.permute.xlu0 %163  }
  0x81   :  { %608 = vst.msk [vmem:[%s1528_s1 + $0xe0] ss:$-30 sm:$0x3] %vm3_vm7, %v164_v44   ;;  %609 = vst.msk [vmem:[%s1528_s1 - $0x1b] ss:$105 sm:$0xc] %vm3_vm7, %v164_v44   ;;  %v181_v45 = vpop.permute.xlu1 %180  }
  0x82   :  { %610 = vst.msk [vmem:[%s1528_s1 + $0x12e] ss:$-11 sm:$0x30] %vm3_vm7, %v164_v44   ;;  %611 = vst.msk [vmem:[%s1528_s1 + $0x214] ss:$-30 sm:$0xc0] %vm3_vm7, %v164_v44  }
  0x83   :  { %614 = vst.msk [vmem:[%s1528_s1 + $0x1a0] ss:$-30 sm:$0x3] %vm3_vm7, %v181_v45   ;;  %615 = vst.msk [vmem:[%s1528_s1 - $0x1b] ss:$169 sm:$0xc] %vm3_vm7, %v181_v45  }
  0x84   :  { %616 = vst.msk [vmem:[%s1528_s1 + $0x2ee] ss:$-75 sm:$0x30] %vm3_vm7, %v181_v45   ;;  %617 = vst.msk [vmem:[%s1528_s1 + $0x1b1] sm:$0x40] %vm3_vm7, %v181_v45   ;;  %v205_v46 = vpop.permute.xlu0 %204  }
  0x85   :  { %618 = vst.msk [vmem:[%s1528_s1 + $0x1f0] sm:$0x80] %vm3_vm7, %v181_v45   ;;  %622 = vst.msk [vmem:[%s1528_s1 + $0x21] ss:$-30 sm:$0x3] %vm3_vm7, %v205_v46   ;;  %v222_v47 = vpop.permute.xlu1 %221  }
  0x86   :  { %623 = vst.msk [vmem:[%s1528_s1 - $0x1a] ss:$41 sm:$0xc] %vm3_vm7, %v205_v46   ;;  %624 = vst.msk [vmem:[%s1528_s1 - $0x91] ss:$53 sm:$0x30] %vm3_vm7, %v205_v46  }
  0x87   :  { %625 = vst.msk [vmem:[%s1528_s1 + $0x155] ss:$-30 sm:$0xc0] %vm3_vm7, %v205_v46   ;;  %628 = vst.msk [vmem:[%s1528_s1 + $0xe1] ss:$-30 sm:$0x3] %vm3_vm7, %v222_v47  }
  0x88   :  { %629 = vst.msk [vmem:[%s1528_s1 - $0x1a] ss:$105 sm:$0xc] %vm3_vm7, %v222_v47   ;;  %630 = vst.msk [vmem:[%s1528_s1 + $0x12f] ss:$-11 sm:$0x30] %vm3_vm7, %v222_v47   ;;  %v239_v48 = vpop.permute.xlu0 %238  }
  0x89   :  { %631 = vst.msk [vmem:[%s1528_s1 + $0x215] ss:$-30 sm:$0xc0] %vm3_vm7, %v222_v47   ;;  %634 = vst.msk [vmem:[%s1528_s1 + $0x1a1] ss:$-30 sm:$0x3] %vm3_vm7, %v239_v48   ;;  %v253_v49 = vpop.permute.xlu1 %252  }
  0x8a   :  { %635 = vst.msk [vmem:[%s1528_s1 - $0x1a] ss:$169 sm:$0xc] %vm3_vm7, %v239_v48   ;;  %636 = vst.msk [vmem:[%s1528_s1 + $0x2ef] ss:$-75 sm:$0x30] %vm3_vm7, %v239_v48  }
  0x8b   :  { %637 = vst.msk [vmem:[%s1528_s1 + $0x1b2] sm:$0x40] %vm3_vm7, %v239_v48   ;;  %638 = vst.msk [vmem:[%s1528_s1 + $0x1f1] sm:$0x80] %vm3_vm7, %v239_v48  }
  0x8c   :  { %639 = vst.msk [vmem:[%s1528_s1 + $0x22] ss:$-30 sm:$0x3] %vm3_vm7, %v253_v49   ;;  %640 = vst.msk [vmem:[%s1528_s1 + $0x9e] ss:$-30 sm:$0xc] %vm3_vm7, %v253_v49   ;;  %v266_v50 = vpop.permute.xlu0 %265  }
  0x8d   :  { %641 = vst.msk [vmem:[%s1528_s1 + $0x11a] ss:$-30 sm:$0x30] %vm3_vm7, %v253_v49   ;;  %642 = vst.msk [vmem:[%s1528_s1 + $0x196] ss:$-30 sm:$0xc0] %vm3_vm7, %v253_v49   ;;  %v278_v51 = vpop.permute.xlu1 %277  }
  0x8e   :  { %644 = vst.msk [vmem:[%s1528_s1 + $0x122] ss:$-30 sm:$0x3] %vm3_vm7, %v266_v50   ;;  %645 = vst.msk [vmem:[%s1528_s1 + $0x19e] ss:$-30 sm:$0xc] %vm3_vm7, %v266_v50  }
  0x8f   :  { %646 = vst.msk [vmem:[%s1528_s1 + $0x21a] ss:$-30 sm:$0x30] %vm3_vm7, %v266_v50   ;;  %647 = vst.msk [vmem:[%s1528_s1 + $0x296] ss:$-30 sm:$0xc0] %vm3_vm7, %v266_v50  }
  0x90   :  { %648 = vst.msk [vmem:[%s1528_s1 + $0x23] ss:$-30 sm:$0x3] %vm3_vm7, %v278_v51   ;;  %649 = vst.msk [vmem:[%s1528_s1 + $0x9f] ss:$-30 sm:$0xc] %vm3_vm7, %v278_v51   ;;  %v291_v52 = vpop.permute.xlu0 %290  }
  0x91   :  { %650 = vst.msk [vmem:[%s1528_s1 + $0x11b] ss:$-30 sm:$0x30] %vm3_vm7, %v278_v51   ;;  %651 = vst.msk [vmem:[%s1528_s1 + $0x197] ss:$-30 sm:$0xc0] %vm3_vm7, %v278_v51   ;;  %v303_v53 = vpop.permute.xlu1 %302  }
  0x92   :  { %653 = vst.msk [vmem:[%s1528_s1 + $0x123] ss:$-30 sm:$0x3] %vm3_vm7, %v291_v52   ;;  %654 = vst.msk [vmem:[%s1528_s1 + $0x19f] ss:$-30 sm:$0xc] %vm3_vm7, %v291_v52  }
  0x93   :  { %655 = vst.msk [vmem:[%s1528_s1 + $0x21b] ss:$-30 sm:$0x30] %vm3_vm7, %v291_v52   ;;  %656 = vst.msk [vmem:[%s1528_s1 + $0x297] ss:$-30 sm:$0xc0] %vm3_vm7, %v291_v52  }
  0x94   :  { %657 = vst.msk [vmem:[%s1528_s1 + $0x24] ss:$-30 sm:$0x3] %vm3_vm7, %v303_v53   ;;  %658 = vst.msk [vmem:[%s1528_s1 + $0xa0] ss:$-30 sm:$0xc] %vm3_vm7, %v303_v53   ;;  %v316_v54 = vpop.permute.xlu0 %315  }
  0x95   :  { %659 = vst.msk [vmem:[%s1528_s1 + $0x11c] ss:$-30 sm:$0x30] %vm3_vm7, %v303_v53   ;;  %660 = vst.msk [vmem:[%s1528_s1 + $0x198] ss:$-30 sm:$0xc0] %vm3_vm7, %v303_v53   ;;  %v328_v55 = vpop.permute.xlu1 %327  }
  0x96   :  { %662 = vst.msk [vmem:[%s1528_s1 + $0x124] ss:$-30 sm:$0x3] %vm3_vm7, %v316_v54   ;;  %663 = vst.msk [vmem:[%s1528_s1 + $0x1a0] ss:$-30 sm:$0xc] %vm3_vm7, %v316_v54  }
  0x97   :  { %664 = vst.msk [vmem:[%s1528_s1 + $0x21c] ss:$-30 sm:$0x30] %vm3_vm7, %v316_v54   ;;  %665 = vst.msk [vmem:[%s1528_s1 + $0x298] ss:$-30 sm:$0xc0] %vm3_vm7, %v316_v54  }
  0x98   :  { %666 = vst.msk [vmem:[%s1528_s1 + $0x25] ss:$-30 sm:$0x3] %vm3_vm7, %v328_v55   ;;  %667 = vst.msk [vmem:[%s1528_s1 + $0xa1] ss:$-30 sm:$0xc] %vm3_vm7, %v328_v55   ;;  %v341_v56 = vpop.permute.xlu0 %340  }
  0x99   :  { %668 = vst.msk [vmem:[%s1528_s1 + $0x11d] ss:$-30 sm:$0x30] %vm3_vm7, %v328_v55   ;;  %669 = vst.msk [vmem:[%s1528_s1 + $0x199] ss:$-30 sm:$0xc0] %vm3_vm7, %v328_v55   ;;  %v353_v57 = vpop.permute.xlu1 %352  }
  0x9a   :  { %671 = vst.msk [vmem:[%s1528_s1 + $0x125] ss:$-30 sm:$0x3] %vm3_vm7, %v341_v56   ;;  %672 = vst.msk [vmem:[%s1528_s1 + $0x1a1] ss:$-30 sm:$0xc] %vm3_vm7, %v341_v56  }
  0x9b   :  { %673 = vst.msk [vmem:[%s1528_s1 + $0x21d] ss:$-30 sm:$0x30] %vm3_vm7, %v341_v56   ;;  %674 = vst.msk [vmem:[%s1528_s1 + $0x299] ss:$-30 sm:$0xc0] %vm3_vm7, %v341_v56  }
  0x9c   :  { %675 = vst.msk [vmem:[%s1528_s1 + $0x26] ss:$-30 sm:$0x3] %vm3_vm7, %v353_v57   ;;  %676 = vst.msk [vmem:[%s1528_s1 + $0xa2] ss:$-30 sm:$0xc] %vm3_vm7, %v353_v57   ;;  %v366_v58 = vpop.permute.xlu0 %365  }
  0x9d   :  { %677 = vst.msk [vmem:[%s1528_s1 + $0x11e] ss:$-30 sm:$0x30] %vm3_vm7, %v353_v57   ;;  %678 = vst.msk [vmem:[%s1528_s1 + $0x19a] ss:$-30 sm:$0xc0] %vm3_vm7, %v353_v57   ;;  %v378_v59 = vpop.permute.xlu1 %377  }
  0x9e   :  { %680 = vst.msk [vmem:[%s1528_s1 + $0x126] ss:$-30 sm:$0x3] %vm3_vm7, %v366_v58   ;;  %681 = vst.msk [vmem:[%s1528_s1 + $0x1a2] ss:$-30 sm:$0xc] %vm3_vm7, %v366_v58  }
  0x9f   :  { %682 = vst.msk [vmem:[%s1528_s1 + $0x21e] ss:$-30 sm:$0x30] %vm3_vm7, %v366_v58   ;;  %683 = vst.msk [vmem:[%s1528_s1 + $0x29a] ss:$-30 sm:$0xc0] %vm3_vm7, %v366_v58  }
  0xa0   :  { %684 = vst.msk [vmem:[%s1528_s1 + $0x27] ss:$-23 sm:$0x3] %vm3_vm7, %v378_v59   ;;  %685 = vst.msk [vmem:[%s1528_s1 + $0x95] ss:$-23 sm:$0xc] %vm3_vm7, %v378_v59   ;;  %v391_v60 = vpop.permute.xlu0 %390  }
  0xa1   :  { %686 = vst.msk [vmem:[%s1528_s1 + $0x103] ss:$-23 sm:$0x30] %vm3_vm7, %v378_v59   ;;  %687 = vst.msk [vmem:[%s1528_s1 + $0x171] ss:$-23 sm:$0xc0] %vm3_vm7, %v378_v59   ;;  %v403_v61 = vpop.permute.xlu1 %402  }
  0xa2   :  { %689 = vst.msk [vmem:[%s1528_s1 + $0x127] ss:$-23 sm:$0x3] %vm3_vm7, %v391_v60   ;;  %690 = vst.msk [vmem:[%s1528_s1 + $0x195] ss:$-23 sm:$0xc] %vm3_vm7, %v391_v60  }
  0xa3   :  { %691 = vst.msk [vmem:[%s1528_s1 + $0x203] ss:$-23 sm:$0x30] %vm3_vm7, %v391_v60   ;;  %692 = vst.msk [vmem:[%s1528_s1 + $0x271] ss:$-23 sm:$0xc0] %vm3_vm7, %v391_v60  }
  0xa4   :  { %693 = vst.msk [vmem:[%s1528_s1 + $0x28] ss:$-23 sm:$0x3] %vm3_vm7, %v403_v61   ;;  %694 = vst.msk [vmem:[%s1528_s1 + $0x96] ss:$-23 sm:$0xc] %vm3_vm7, %v403_v61   ;;  %v416_v62 = vpop.permute.xlu0 %415  }
  0xa5   :  { %695 = vst.msk [vmem:[%s1528_s1 + $0x104] ss:$-23 sm:$0x30] %vm3_vm7, %v403_v61   ;;  %696 = vst.msk [vmem:[%s1528_s1 + $0x172] ss:$-23 sm:$0xc0] %vm3_vm7, %v403_v61   ;;  %v428_v63 = vpop.permute.xlu1 %427  }
  0xa6   :  { %698 = vst.msk [vmem:[%s1528_s1 + $0x128] ss:$-23 sm:$0x3] %vm3_vm7, %v416_v62   ;;  %699 = vst.msk [vmem:[%s1528_s1 + $0x196] ss:$-23 sm:$0xc] %vm3_vm7, %v416_v62  }
  0xa7   :  { %700 = vst.msk [vmem:[%s1528_s1 + $0x204] ss:$-23 sm:$0x30] %vm3_vm7, %v416_v62   ;;  %701 = vst.msk [vmem:[%s1528_s1 + $0x272] ss:$-23 sm:$0xc0] %vm3_vm7, %v416_v62  }
  0xa8   :  { %702 = vst.msk [vmem:[%s1528_s1 + $0x30] ss:$-30 sm:$0x3] %vm3_vm7, %v428_v63   ;;  %703 = vst.msk [vmem:[%s1528_s1 + $0xac] ss:$-30 sm:$0xc] %vm3_vm7, %v428_v63   ;;  %v441_v0 = vpop.permute.xlu0 %440  }
  0xa9   :  { %704 = vst.msk [vmem:[%s1528_s1 + $0x128] ss:$-30 sm:$0x30] %vm3_vm7, %v428_v63   ;;  %705 = vst.msk [vmem:[%s1528_s1 + $0x1a4] ss:$-30 sm:$0xc0] %vm3_vm7, %v428_v63   ;;  %v453_v1 = vpop.permute.xlu1 %452  }
  0xaa   :  { %707 = vst.msk [vmem:[%s1528_s1 + $0x130] ss:$-30 sm:$0x3] %vm3_vm7, %v441_v0   ;;  %708 = vst.msk [vmem:[%s1528_s1 + $0x1ac] ss:$-30 sm:$0xc] %vm3_vm7, %v441_v0  }
  0xab   :  { %709 = vst.msk [vmem:[%s1528_s1 + $0x228] ss:$-30 sm:$0x30] %vm3_vm7, %v441_v0   ;;  %710 = vst.msk [vmem:[%s1528_s1 + $0x2a4] ss:$-30 sm:$0xc0] %vm3_vm7, %v441_v0  }
  0xac   :  { %711 = vst.msk [vmem:[%s1528_s1 + $0x31] ss:$-30 sm:$0x3] %vm3_vm7, %v453_v1   ;;  %712 = vst.msk [vmem:[%s1528_s1 + $0xad] ss:$-30 sm:$0xc] %vm3_vm7, %v453_v1   ;;  %v466_v2 = vpop.permute.xlu0 %465  }
  0xad   :  { %713 = vst.msk [vmem:[%s1528_s1 + $0x129] ss:$-30 sm:$0x30] %vm3_vm7, %v453_v1   ;;  %714 = vst.msk [vmem:[%s1528_s1 + $0x1a5] ss:$-30 sm:$0xc0] %vm3_vm7, %v453_v1   ;;  %v478_v3 = vpop.permute.xlu1 %477  }
  0xae   :  { %716 = vst.msk [vmem:[%s1528_s1 + $0x131] ss:$-30 sm:$0x3] %vm3_vm7, %v466_v2   ;;  %717 = vst.msk [vmem:[%s1528_s1 + $0x1ad] ss:$-30 sm:$0xc] %vm3_vm7, %v466_v2  }
  0xaf   :  { %718 = vst.msk [vmem:[%s1528_s1 + $0x229] ss:$-30 sm:$0x30] %vm3_vm7, %v466_v2   ;;  %719 = vst.msk [vmem:[%s1528_s1 + $0x2a5] ss:$-30 sm:$0xc0] %vm3_vm7, %v466_v2  }
  0xb0   :  { %720 = vst.msk [vmem:[%s1528_s1 + $0x32] ss:$-30 sm:$0x3] %vm3_vm7, %v478_v3   ;;  %721 = vst.msk [vmem:[%s1528_s1 + $0xae] ss:$-30 sm:$0xc] %vm3_vm7, %v478_v3   ;;  %v491_v4 = vpop.permute.xlu0 %490  }
  0xb1   :  { %722 = vst.msk [vmem:[%s1528_s1 + $0x12a] ss:$-30 sm:$0x30] %vm3_vm7, %v478_v3   ;;  %723 = vst.msk [vmem:[%s1528_s1 + $0x1a6] ss:$-30 sm:$0xc0] %vm3_vm7, %v478_v3   ;;  %v503_v5 = vpop.permute.xlu1 %502  }
  0xb2   :  { %725 = vst.msk [vmem:[%s1528_s1 + $0x132] ss:$-30 sm:$0x3] %vm3_vm7, %v491_v4   ;;  %726 = vst.msk [vmem:[%s1528_s1 + $0x1ae] ss:$-30 sm:$0xc] %vm3_vm7, %v491_v4  }
  0xb3   :  { %727 = vst.msk [vmem:[%s1528_s1 + $0x22a] ss:$-30 sm:$0x30] %vm3_vm7, %v491_v4   ;;  %728 = vst.msk [vmem:[%s1528_s1 + $0x2a6] ss:$-30 sm:$0xc0] %vm3_vm7, %v491_v4  }
  0xb4   :  { %729 = vst.msk [vmem:[%s1528_s1 + $0x33] ss:$-30 sm:$0x3] %vm3_vm7, %v503_v5   ;;  %730 = vst.msk [vmem:[%s1528_s1 + $0xaf] ss:$-30 sm:$0xc] %vm3_vm7, %v503_v5   ;;  %v516_v6 = vpop.permute.xlu0 %515  }
  0xb5   :  { %731 = vst.msk [vmem:[%s1528_s1 + $0x12b] ss:$-30 sm:$0x30] %vm3_vm7, %v503_v5   ;;  %732 = vst.msk [vmem:[%s1528_s1 + $0x1a7] ss:$-30 sm:$0xc0] %vm3_vm7, %v503_v5   ;;  %v528_v7 = vpop.permute.xlu1 %527  }
  0xb6   :  { %734 = vst.msk [vmem:[%s1528_s1 + $0x133] ss:$-30 sm:$0x3] %vm3_vm7, %v516_v6   ;;  %735 = vst.msk [vmem:[%s1528_s1 + $0x1af] ss:$-30 sm:$0xc] %vm3_vm7, %v516_v6  }
  0xb7   :  { %736 = vst.msk [vmem:[%s1528_s1 + $0x22b] ss:$-30 sm:$0x30] %vm3_vm7, %v516_v6   ;;  %737 = vst.msk [vmem:[%s1528_s1 + $0x2a7] ss:$-30 sm:$0xc0] %vm3_vm7, %v516_v6  }
  0xb8   :  { %738 = vst.msk [vmem:[%s1528_s1 + $0x34] ss:$-30 sm:$0x3] %vm3_vm7, %v528_v7   ;;  %739 = vst.msk [vmem:[%s1528_s1 + $0xb0] ss:$-30 sm:$0xc] %vm3_vm7, %v528_v7   ;;  %v541_v8 = vpop.permute.xlu0 %540  }
  0xb9   :  { %740 = vst.msk [vmem:[%s1528_s1 + $0x12c] ss:$-30 sm:$0x30] %vm3_vm7, %v528_v7   ;;  %741 = vst.msk [vmem:[%s1528_s1 + $0x1a8] ss:$-30 sm:$0xc0] %vm3_vm7, %v528_v7  }
  0xba   :  { %743 = vst.msk [vmem:[%s1528_s1 + $0x134] ss:$-30 sm:$0x3] %vm3_vm7, %v541_v8   ;;  %744 = vst.msk [vmem:[%s1528_s1 + $0x1b0] ss:$-30 sm:$0xc] %vm3_vm7, %v541_v8  }
  0xbb   :  { %745 = vst.msk [vmem:[%s1528_s1 + $0x22c] ss:$-30 sm:$0x30] %vm3_vm7, %v541_v8   ;;  %746 = vst.msk [vmem:[%s1528_s1 + $0x2a8] ss:$-30 sm:$0xc0] %vm3_vm7, %v541_v8  }

// kernel: discriminator_cqt_forward.9
= control target key start
LH: loop header
LB: loop body
LE: loop exit
PB: predicated region body
PF: predicated region fallthrough
CT: control target
= control target key end

     0   :  { %v281_v0 = vmov 0.0   ;;  %vm282_vm0 = vmmov 0   ;;  %vm21_vm1 = vcmask 261120   ;;  %v283_v3 = vmov 0   ;;  %s355_s0 = inlined_call_operand.vmem [shape: bf16[1,56,288], index: 0, kind: input, shape index: {}]   ;;  %s356_s2 = inlined_call_operand.vmem [shape: f32[1,8,1], index: 2, kind: input, shape index: {}]   ;;  %s357_s1 = inlined_call_operand.vmem [shape: bf16[1,8,56], index: 1, kind: input, shape index: {}]   ;;  %s358_s3 = inlined_call_operand.vmem [shape: f32[1,8,288], index: 3, kind: output, shape index: {}]  }
   0x1   :  { %250 = vmatprep.subr.bf16.mxu1 %v281_v0  ;;  %v266_v1 = vld [vmem:[%s355_s0 + $0x4] ss:$12 sps:$4 sm:$0xff]   ;;  %258 = vmatprep.mubr.msk.bf16.mxu1 %vm282_vm0, %v281_v0  ;;  %v268_v2 = vld [vmem:[%s355_s0 + $0x8] ss:$12 sps:$4 sm:$0xff]   ;;  %22 = vst.msk [vmem:[#allocation2 + $0x10] sm:$0xff] %vm21_vm1, %v281_v0  ;;  %vm101_vm2 = vcmask 1043456  }
   0x2   :  { %143 = vmatprep.mubr.bf16.mxu0 %v283_v3  ;;  %265 = vset.pattern.permute.xlu0 %v283_v3  ;;  %v269_v4 = vld [vmem:[%s355_s0] ss:$12 sps:$4 sm:$0xff]   ;;  %v270_v5 = vld [vmem:[%s355_s0 + $0x1c] ss:$12 sps:$4 sm:$0xff]   ;;  %v273_v7 = vld [vmem:[%s355_s0 + $0x18] ss:$12 sps:$4 sm:$0xff]  }
   0x3   :  { %111 = vmatprep.subr.bf16.mxu0 %v266_v1  ;;  %251 = vmatpush3.bf16.msra.mxu1 %v268_v2  ;;  %v272_v6 = vld [vmem:[%s355_s0 + $0x20] ss:$12 sps:$4 sm:$0xff]   ;;  %v276_v9 = vld [vmem:[%s355_s0 + $0x38] ss:$12 sps:$4 sm:$0xff]   ;;  %v277_v11 = vld [vmem:[%s355_s0 + $0x30] ss:$12 sps:$4 sm:$0xff]  }
   0x4   :  { %112 = vmatpush1.bf16.msra.mxu0 %v269_v4  ;;  %252 = vmatprep.subr.bf16.mxu1 %v281_v0  ;;  %v274_v8 = vld [vmem:[%s355_s0 + $0x34] ss:$12 sps:$4 sm:$0xff]   ;;  %v39_v10 = vld [vmem:[%s355_s0 + $0x48] sm:$0xff]  ;;  %v279_v12 = vld [vmem:[%s355_s0 + $0x50] ss:$0 sps:$4 sm:$0xff]   ;;  %vm97_vm3 = vcmask 457728  }
   0x5   :  { %113 = vmatprep.subr.bf16.mxu0 %v270_v5  ;;  %v205_v13 = vld [vmem:[%s356_s2] sm:$0xff]  ;;  %v240_v14 = vcombine.high %v39_v10, %v39_v10  ;;  %v239_v15 = vcombine.low %v39_v10, %v39_v10  ;;  %v109_v16 = vsel %vm101_vm2, %v279_v12, 0 }
   0x6   :  { %208 = vperm.xlu0 %265, %v205_v13   ;;  %v26_v18 = vld [vmem:[%s357_s1] sm:$0xf] }
   0x7   :  { %253 = vmatpush3.bf16.msra.mxu1 %v272_v6  ;;  %v103_v17 = vsel %vm101_vm2, %v239_v15, 0 }
   0x8   :  { %114 = vmatpush1.bf16.msra.mxu0 %v273_v7  ;;  %254 = vmatprep.subr.bf16.mxu1 %v281_v0  ;;  %v25_v19 = vld [vmem:[#allocation2 + $0x10] sm:$0xff] }
   0x9   :  { %115 = vmatprep.subr.bf16.mxu0 %v274_v8 }
   0xb   :  { %255 = vmatpush3.bf16.msra.mxu1 %v276_v9 }
   0xc   :  { %116 = vmatpush1.bf16.msra.mxu0 %v277_v11  ;;  %256 = vmatprep.subr.bf16.mxu1 %v281_v0 }
   0xd   :  { %242 = vmatprep.subr.msk.bf16.mxu0 %vm101_vm2, %v240_v14 }
   0xf   :  { %257 = vmatpush3.bf16.msra.mxu1 %v109_v16 }
  0x10   :  { %118 = vmatpush1.bf16.msra.mxu0 %v103_v17 }
  0x12   :  { %259 = vmatmul.mubr.msk.bf16.vlgmr.msra.gmra.mrb[0].mxu1 %vm97_vm3, %v26_v18 }
  0x13   :  { %243 = vmatmul.mubr.msk.bf16.vlgmr.msra.gmra.mrb[0].mxu0 %vm97_vm3, %v26_v18 }
  0x85   :  { %v209_v21 = vpop.permute.xlu0 %208 }
  0xe5   :  { %v186_v20 = vpop.f32.mrb[0].mxu1 }
  0xe6   :  { %v194_v22 = vadd.f32 %v186_v20, %v25_v19  ;;  %v145_v23 = vpop.f32.mrb[0].mxu0  ;;  %v260_v24 = vpop.f32.mrb[1].mxu1 }
  0xe7   :  { %v147_v25 = vpop.f32.mrb[1].mxu0  ;;  %v189_v26 = vpop.f32.mrb[2].mxu1  ;;  %v211_v30 = vadd.f32 %v209_v21, %v145_v23 }
  0xe8   :  { %198 = vst.msk [vmem:[#allocation2 + $0x10] sm:$0xff] %vm21_vm1, %v194_v22  ;;  %v149_v27 = vpop.f32.mrb[2].mxu0  ;;  %v261_v28 = vpop.f32.mrb[3].mxu1  ;;  %v212_v31 = vadd.f32 %v209_v21, %v147_v25 }
  0xe9   :  { %v150_v29 = vpop.f32.mrb[3].mxu0  ;;  %vm214_vm4 = vcmp.ge.f32.partialorder %v211_v30, 0.0  ;;  %v217_v32 = vmul.f32 0.1, %v211_v30 }
  0xea   :  { %vm215_vm5 = vcmp.ge.f32.partialorder %v212_v31, 0.0  ;;  %v218_v33 = vmul.f32 0.1, %v212_v31 }
  0xeb   :  { %v220_v34 = vsel %vm214_vm4, %v211_v30, %v217_v32 }
  0xec   :  { %v221_v35 = vsel %vm215_vm5, %v212_v31, %v218_v33  ;;  %223 = vst [vmem:[%s358_s3] sm:$0xff] %v220_v34 }
  0xed   :  { %224 = vst [vmem:[%s358_s3 + $0x8] sm:$0xff] %v221_v35 }
  0xef   :  { %v204_v36 = vld [vmem:[#allocation2 + $0x10] sm:$0xff] }
  0xf0   :  { %v213_v37 = vadd.f32 %v209_v21, %v204_v36 }
  0xf2   :  { %vm216_vm6 = vcmp.ge.f32.partialorder %v213_v37, 0.0  ;;  %v219_v38 = vmul.f32 0.1, %v213_v37 }
  0xf4   :  { %v222_v39 = vsel %vm216_vm6, %v213_v37, %v219_v38 }
  0xf5   :  { %225 = vst.msk [vmem:[%s358_s3 + $0x10] sm:$0xff] %vm21_vm1, %v222_v39 }

// kernel: discriminator_cqt_forward.10
= control target key start
LH: loop header
LB: loop body
LE: loop exit
PB: predicated region body
PF: predicated region fallthrough
CT: control target
= control target key end

     0   :  { %v353_v1 = vmov 0   ;;  %vm20_vm0 = vcmask 130048   ;;  %v354_v3 = vmov 0.0   ;;  %vm193_vm1 = vcmask 719872   ;;  %s471_s0 = inlined_call_operand.vmem [shape: bf16[1,216,144], index: 0, kind: input, shape index: {}]   ;;  %s472_s1 = inlined_call_operand.vmem [shape: bf16[1,8,216], index: 1, kind: input, shape index: {}]   ;;  %s473_s2 = inlined_call_operand.vmem [shape: f32[1,8,1], index: 2, kind: input, shape index: {}]   ;;  %s474_s3 = inlined_call_operand.vmem [shape: f32[1,8,144], index: 3, kind: output, shape index: {}]  }
   0x1   :  { %v310_v0 = vld [vmem:[%s471_s0 + $0x4] ss:$8 sps:$4 sm:$0xff]   ;;  %309 = vset.pattern.permute.xlu0 %v353_v1  ;;  %v312_v2 = vld [vmem:[%s471_s0] ss:$8 sps:$4 sm:$0xff]   ;;  %21 = vst.msk [vmem:[#allocation2 + $0x8] sm:$0xff] %vm20_vm0, %v354_v3  ;;  %v51_v30 = vld [vmem:[%s471_s0 + $0xd0] sm:$0xff] }
   0x2   :  { %204 = vmatprep.subr.bf16.mxu0 %v310_v0  ;;  %v313_v4 = vld [vmem:[%s471_s0 + $0x14] ss:$8 sps:$4 sm:$0xff]   ;;  %v315_v5 = vld [vmem:[%s471_s0 + $0x10] ss:$8 sps:$4 sm:$0xff]   ;;  %v316_v6 = vld [vmem:[%s471_s0 + $0x24] ss:$8 sps:$4 sm:$0xff]   ;;  %v304_v32 = vcombine.high %v51_v30, %v51_v30  ;;  %v303_v33 = vcombine.low %v51_v30, %v51_v30 }
   0x3   :  { %205 = vmatpush1.bf16.msra.mxu0 %v312_v2  ;;  %v318_v7 = vld [vmem:[%s471_s0 + $0x20] ss:$8 sps:$4 sm:$0xff]   ;;  %v319_v8 = vld [vmem:[%s471_s0 + $0x34] ss:$8 sps:$4 sm:$0xff]   ;;  %v321_v9 = vld [vmem:[%s471_s0 + $0x30] ss:$8 sps:$4 sm:$0xff]  }
   0x4   :  { %206 = vmatprep.subr.bf16.mxu0 %v313_v4  ;;  %v322_v10 = vld [vmem:[%s471_s0 + $0x44] ss:$8 sps:$4 sm:$0xff]   ;;  %v324_v11 = vld [vmem:[%s471_s0 + $0x40] ss:$8 sps:$4 sm:$0xff]   ;;  %v325_v12 = vld [vmem:[%s471_s0 + $0x54] ss:$8 sps:$4 sm:$0xff]  }
   0x5   :  { %v24_v13 = vld [vmem:[%s472_s1] sm:$0xff]  ;;  %v327_v16 = vld [vmem:[%s471_s0 + $0x50] ss:$8 sps:$4 sm:$0xff]   ;;  %v331_v19 = vld [vmem:[%s471_s0 + $0x74] ss:$8 sps:$4 sm:$0xff]   ;;  %vm197_vm2 = vcmask 1043456  }
   0x6   :  { %v276_v14 = vcombine.high %v24_v13, %v24_v13  ;;  %v255_v15 = vld [vmem:[%s473_s2] sm:$0xff]  ;;  %v333_v20 = vld [vmem:[%s471_s0 + $0x70] ss:$8 sps:$4 sm:$0xff]   ;;  %v337_v23 = vld [vmem:[%s471_s0 + $0x94] ss:$8 sps:$4 sm:$0xff]   ;;  %v199_v34 = vsel %vm197_vm2, %v303_v33, 0  ;;  %v275_v35 = vcombine.low %v24_v13, %v24_v13 }
   0x7   :  { %207 = vmatpush1.bf16.msra.mxu0 %v315_v5  ;;  %258 = vperm.xlu0 %309, %v255_v15   ;;  %v328_v17 = vld [vmem:[%s471_s0 + $0x64] ss:$8 sps:$4 sm:$0xff]   ;;  %v330_v18 = vld [vmem:[%s471_s0 + $0x60] ss:$8 sps:$4 sm:$0xff]   ;;  %v339_v24 = vld [vmem:[%s471_s0 + $0x90] ss:$8 sps:$4 sm:$0xff]  }
   0x8   :  { %208 = vmatprep.subr.bf16.mxu0 %v316_v6  ;;  %306 = vmatprep.mubr.msk.bf16.mxu0 %vm193_vm1, %v276_v14  ;;  %v334_v21 = vld [vmem:[%s471_s0 + $0x84] ss:$8 sps:$4 sm:$0xff]   ;;  %v336_v22 = vld [vmem:[%s471_s0 + $0x80] ss:$8 sps:$4 sm:$0xff]   ;;  %v343_v27 = vld [vmem:[%s471_s0 + $0xb4] ss:$8 sps:$4 sm:$0xff]  }
   0x9   :  { %v340_v25 = vld [vmem:[%s471_s0 + $0xa4] ss:$8 sps:$4 sm:$0xff]   ;;  %v342_v26 = vld [vmem:[%s471_s0 + $0xa0] ss:$8 sps:$4 sm:$0xff]   ;;  %v345_v28 = vld [vmem:[%s471_s0 + $0xb0] ss:$8 sps:$4 sm:$0xff]  }
   0xa   :  { %v346_v29 = vld [vmem:[%s471_s0 + $0xc4] ss:$8 sps:$4 sm:$0xff]   ;;  %v348_v31 = vld [vmem:[%s471_s0 + $0xc0] ss:$8 sps:$4 sm:$0xff]   ;;  %v23_v36 = vld [vmem:[#allocation2 + $0x8] sm:$0xff] }
   0xb   :  { %209 = vmatpush1.bf16.msra.mxu0 %v318_v7 }
   0xc   :  { %210 = vmatprep.subr.bf16.mxu0 %v319_v8 }
   0xf   :  { %211 = vmatpush1.bf16.msra.mxu0 %v321_v9 }
  0x10   :  { %212 = vmatprep.subr.bf16.mxu0 %v322_v10 }
  0x13   :  { %213 = vmatpush1.bf16.msra.mxu0 %v324_v11 }
  0x14   :  { %214 = vmatprep.subr.bf16.mxu0 %v325_v12 }
  0x17   :  { %215 = vmatpush1.bf16.msra.mxu0 %v327_v16 }
  0x18   :  { %216 = vmatprep.subr.bf16.mxu0 %v328_v17 }
  0x1b   :  { %217 = vmatpush1.bf16.msra.mxu0 %v330_v18 }
  0x1c   :  { %218 = vmatprep.subr.bf16.mxu0 %v331_v19 }
  0x1f   :  { %219 = vmatpush1.bf16.msra.mxu0 %v333_v20 }
  0x20   :  { %220 = vmatprep.subr.bf16.mxu0 %v334_v21 }
  0x23   :  { %221 = vmatpush1.bf16.msra.mxu0 %v336_v22 }
  0x24   :  { %222 = vmatprep.subr.bf16.mxu0 %v337_v23 }
  0x27   :  { %223 = vmatpush1.bf16.msra.mxu0 %v339_v24 }
  0x28   :  { %224 = vmatprep.subr.bf16.mxu0 %v340_v25 }
  0x2b   :  { %225 = vmatpush1.bf16.msra.mxu0 %v342_v26 }
  0x2c   :  { %226 = vmatprep.subr.bf16.mxu0 %v343_v27 }
  0x2f   :  { %227 = vmatpush1.bf16.msra.mxu0 %v345_v28 }
  0x30   :  { %228 = vmatprep.subr.bf16.mxu0 %v346_v29 }
  0x33   :  { %229 = vmatpush1.bf16.msra.mxu0 %v348_v31 }
  0x34   :  { %305 = vmatprep.subr.msk.bf16.mxu0 %vm197_vm2, %v304_v32 }
  0x37   :  { %231 = vmatpush1.bf16.msra.mxu0 %v199_v34 }
  0x3a   :  { %237 = vmatmul.mubr.bf16.vlgmr.msra.gmra.mrb[0].mxu0 %v275_v35 }
  0x86   :  { %v259_v38 = vpop.permute.xlu0 %258 }
 0x10d   :  { %v238_v37 = vpop.f32.mrb[0].mxu0 }
 0x10e   :  { %v240_v39 = vpop.f32.mrb[1].mxu0  ;;  %v261_v43 = vadd.f32 %v259_v38, %v238_v37 }
 0x10f   :  { %v246_v40 = vadd.f32 %v240_v39, %v23_v36  ;;  %v242_v41 = vpop.f32.mrb[2].mxu0 }
 0x110   :  { %v243_v42 = vpop.f32.mrb[3].mxu0  ;;  %vm263_vm3 = vcmp.ge.f32.partialorder %v261_v43, 0.0  ;;  %v265_v44 = vmul.f32 0.1, %v261_v43 }
 0x111   :  { %249 = vst.msk [vmem:[#allocation2 + $0x8] sm:$0xff] %vm20_vm0, %v246_v40 }
 0x112   :  { %v267_v45 = vsel %vm263_vm3, %v261_v43, %v265_v44 }
 0x113   :  { %269 = vst [vmem:[%s474_s3] sm:$0xff] %v267_v45 }
 0x118   :  { %v254_v46 = vld [vmem:[#allocation2 + $0x8] sm:$0xff] }
 0x119   :  { %v262_v47 = vadd.f32 %v259_v38, %v254_v46 }
 0x11b   :  { %vm264_vm4 = vcmp.ge.f32.partialorder %v262_v47, 0.0  ;;  %v266_v48 = vmul.f32 0.1, %v262_v47 }
 0x11d   :  { %v268_v49 = vsel %vm264_vm4, %v262_v47, %v266_v48 }
 0x11e   :  { %270 = vst.msk [vmem:[%s474_s3 + $0x8] sm:$0xff] %vm20_vm0, %v268_v49 }

// kernel: discriminator_cqt_forward.13
= control target key start
LH: loop header
LB: loop body
LE: loop exit
PB: predicated region body
PF: predicated region fallthrough
CT: control target
= control target key end

     0   :  { %v167_v0 = vmov 0.0   ;;  %vm168_vm0 = vmmov 0   ;;  %v169_v3 = vmov 0   ;;  %vm21_vm1 = vcmask 581632   ;;  %s217_s0 = inlined_call_operand.vmem [shape: bf16[1,72,72], index: 0, kind: input, shape index: {}]   ;;  %s218_s2 = inlined_call_operand.<no memory space> [shape: f32[1,1,1], index: 2, kind: input, shape index: {}]   ;;  %s219_s1 = inlined_call_operand.vmem [shape: bf16[1,1,72], index: 1, kind: input, shape index: {}]   ;;  %s220_s3 = inlined_call_operand.vmem [shape: f32[1,1,72], index: 3, kind: output, shape index: {}]  }
   0x1   :  { %144 = vmatprep.subr.bf16.mxu0 %v167_v0  ;;  %v162_v1 = vld [vmem:[%s217_s0] sm:$0xff]   ;;  %154 = vmatprep.mubr.msk.bf16.mxu0 %vm168_vm0, %v167_v0  ;;  %v8_v2 = vstv %s218_s2  ;;  %v163_v4 = vld [vmem:[%s217_s0 + $0x8] sm:$0xff]   ;;  %22 = vst.msk [vmem:[#allocation2] sm:$0x1] %vm21_vm1, %v167_v0  ;;  %v164_v5 = vld [vmem:[%s217_s0 + $0x10] sm:$0xff]   ;;  %vm65_vm2 = vcmask 1043456   ;;  %v122_v11 = vlaneseq }
   0x2   :  { %161 = vset.pattern.permute.xlu0 %v169_v3  ;;  %9 = vst [vmem:[#allocation3] sm:$0x1] %v8_v2  ;;  %145 = vmatpush3.bf16.msra.mxu0 %v162_v1  ;;  %v165_v7 = vld [vmem:[%s217_s0 + $0x18] sm:$0xff]   ;;  %v166_v8 = vld [vmem:[%s217_s0 + $0x20] ss:$0 sps:$4 sm:$0xff]   ;;  %vm61_vm3 = vcmask 588800  }
   0x3   :  { %146 = vmatprep.subr.bf16.mxu0 %v167_v0  ;;  %v67_v9 = vsel %vm65_vm2, %v166_v8, 0  ;;  %v24_v10 = vld [vmem:[%s219_s1] sm:$0x1]  ;;  %v123_v13 = vshrl.u32 %v122_v11, 7 }
   0x5   :  { %v124_v19 = vsub.s32 0, %v123_v13 }
   0x6   :  { %147 = vmatpush3.bf16.msra.mxu0 %v163_v4 }
   0x7   :  { %148 = vmatprep.subr.bf16.mxu0 %v167_v0 }
   0x8   :  { %v23_v12 = vld [vmem:[#allocation2] sm:$0x1] }
   0x9   :  { %v116_v6 = vld [vmem:[#allocation3] sm:$0x1] }
   0xa   :  { %119 = vperm.xlu0 %161, %v116_v6   ;;  %149 = vmatpush3.bf16.msra.mxu0 %v164_v5 }
   0xb   :  { %150 = vmatprep.subr.bf16.mxu0 %v167_v0 }
   0xe   :  { %151 = vmatpush3.bf16.msra.mxu0 %v165_v7 }
   0xf   :  { %152 = vmatprep.subr.bf16.mxu0 %v167_v0 }
  0x12   :  { %153 = vmatpush3.bf16.msra.mxu0 %v67_v9 }
  0x15   :  { %155 = vmatmul.mubr.msk.bf16.vlgmr.msra.gmra.mrb[0].mxu0 %vm61_vm3, %v24_v10 }
  0x89   :  { %v120_v20 = vpop.permute.xlu0 %119 }
  0x8a   :  { %v125_v21 = vrot.slane %v120_v20, %v124_v19 }
  0xe8   :  { %v103_v14 = vpop.f32.mrb[0].mxu0 }
  0xe9   :  { %v109_v15 = vadd.f32 %v103_v14, %v23_v12  ;;  %v156_v16 = vpop.f32.mrb[1].mxu0 }
  0xea   :  { %v106_v17 = vpop.f32.mrb[2].mxu0 }
  0xeb   :  { %111 = vst.msk [vmem:[#allocation2] sm:$0x1] %vm21_vm1, %v109_v15  ;;  %v157_v18 = vpop.f32.mrb[3].mxu0 }
  0xf2   :  { %v115_v22 = vld [vmem:[#allocation2] sm:$0x1] }
  0xf3   :  { %v126_v23 = vadd.f32 %v125_v21, %v115_v22 }
  0xf5   :  { %127 = vst.msk [vmem:[%s220_s3] sm:$0x1] %vm21_vm1, %v126_v23 }

// kernel: discriminator_cqt_forward.11
= control target key start
LH: loop header
LB: loop body
LE: loop exit
PB: predicated region body
PF: predicated region fallthrough
CT: control target
= control target key end

     0   :  { %vm19_vm0 = vcmask 588800   ;;  %v243_v0 = vmov 0   ;;  %v244_v2 = vmov 0.0   ;;  %vm137_vm1 = vcmask 719872   ;;  %s319_s0 = inlined_call_operand.vmem [shape: bf16[1,216,72], index: 0, kind: input, shape index: {}]   ;;  %s320_s1 = inlined_call_operand.vmem [shape: bf16[1,8,216], index: 1, kind: input, shape index: {}]   ;;  %s321_s2 = inlined_call_operand.vmem [shape: f32[1,8,1], index: 2, kind: input, shape index: {}]   ;;  %s322_s3 = inlined_call_operand.vmem [shape: f32[1,8,72], index: 3, kind: output, shape index: {}]  }
   0x1   :  { %145 = vmatprep.subr.bf16.mxu0 %v243_v0  ;;  %v227_v1 = vld [vmem:[%s319_s0] sm:$0xff]   ;;  %226 = vset.pattern.permute.xlu0 %v243_v0  ;;  %20 = vst.msk [vmem:[#allocation2] sm:$0xff] %vm19_vm0, %v244_v2  ;;  %v228_v3 = vld [vmem:[%s319_s0 + $0x8] sm:$0xff]   ;;  %v229_v4 = vld [vmem:[%s319_s0 + $0x10] sm:$0xff]   ;;  %vm141_vm2 = vcmask 1043456  }
   0x2   :  { %146 = vmatpush1.bf16.msra.mxu0 %v227_v1  ;;  %v230_v5 = vld [vmem:[%s319_s0 + $0x18] sm:$0xff]   ;;  %v22_v6 = vld [vmem:[%s320_s1] sm:$0xff]  ;;  %v232_v10 = vld [vmem:[%s319_s0 + $0x28] sm:$0xff]  }
   0x3   :  { %147 = vmatprep.subr.bf16.mxu0 %v243_v0  ;;  %v231_v7 = vld [vmem:[%s319_s0 + $0x20] sm:$0xff]   ;;  %v208_v8 = vcombine.high %v22_v6, %v22_v6  ;;  %v233_v11 = vld [vmem:[%s319_s0 + $0x30] sm:$0xff]   ;;  %v234_v12 = vld [vmem:[%s319_s0 + $0x38] sm:$0xff]   ;;  %v207_v20 = vcombine.low %v22_v6, %v22_v6 }
   0x4   :  { %v192_v9 = vld [vmem:[%s321_s2] sm:$0xff]  ;;  %v236_v14 = vld [vmem:[%s319_s0 + $0x48] sm:$0xff]   ;;  %v237_v15 = vld [vmem:[%s319_s0 + $0x50] sm:$0xff]  }
   0x5   :  { %195 = vperm.xlu0 %226, %v192_v9   ;;  %223 = vmatprep.mubr.msk.bf16.mxu0 %vm137_vm1, %v208_v8  ;;  %v235_v13 = vld [vmem:[%s319_s0 + $0x40] sm:$0xff]   ;;  %v238_v16 = vld [vmem:[%s319_s0 + $0x58] sm:$0xff]   ;;  %v240_v18 = vld [vmem:[%s319_s0 + $0x68] ss:$0 sps:$4 sm:$0xff]  }
   0x6   :  { %148 = vmatpush1.bf16.msra.mxu0 %v228_v3  ;;  %v239_v17 = vld [vmem:[%s319_s0 + $0x60] sm:$0xff]   ;;  %v143_v19 = vsel %vm141_vm2, %v240_v18, 0 }
   0x7   :  { %149 = vmatprep.subr.bf16.mxu0 %v243_v0 }
   0x8   :  { %v21_v21 = vld [vmem:[#allocation2] sm:$0xff] }
   0xa   :  { %150 = vmatpush1.bf16.msra.mxu0 %v229_v4 }
   0xb   :  { %151 = vmatprep.subr.bf16.mxu0 %v243_v0 }
   0xe   :  { %152 = vmatpush1.bf16.msra.mxu0 %v230_v5 }
   0xf   :  { %153 = vmatprep.subr.bf16.mxu0 %v243_v0 }
  0x12   :  { %154 = vmatpush1.bf16.msra.mxu0 %v231_v7 }
  0x13   :  { %155 = vmatprep.subr.bf16.mxu0 %v243_v0 }
  0x16   :  { %156 = vmatpush1.bf16.msra.mxu0 %v232_v10 }
  0x17   :  { %157 = vmatprep.subr.bf16.mxu0 %v243_v0 }
  0x1a   :  { %158 = vmatpush1.bf16.msra.mxu0 %v233_v11 }
  0x1b   :  { %159 = vmatprep.subr.bf16.mxu0 %v243_v0 }
  0x1e   :  { %160 = vmatpush1.bf16.msra.mxu0 %v234_v12 }
  0x1f   :  { %161 = vmatprep.subr.bf16.mxu0 %v243_v0 }
  0x22   :  { %162 = vmatpush1.bf16.msra.mxu0 %v235_v13 }
  0x23   :  { %163 = vmatprep.subr.bf16.mxu0 %v243_v0 }
  0x26   :  { %164 = vmatpush1.bf16.msra.mxu0 %v236_v14 }
  0x27   :  { %165 = vmatprep.subr.bf16.mxu0 %v243_v0 }
  0x2a   :  { %166 = vmatpush1.bf16.msra.mxu0 %v237_v15 }
  0x2b   :  { %167 = vmatprep.subr.bf16.mxu0 %v243_v0 }
  0x2e   :  { %168 = vmatpush1.bf16.msra.mxu0 %v238_v16 }
  0x2f   :  { %169 = vmatprep.subr.bf16.mxu0 %v243_v0 }
  0x32   :  { %170 = vmatpush1.bf16.msra.mxu0 %v239_v17 }
  0x33   :  { %171 = vmatprep.subr.bf16.mxu0 %v243_v0 }
  0x36   :  { %172 = vmatpush1.bf16.msra.mxu0 %v143_v19 }
  0x39   :  { %178 = vmatmul.mubr.bf16.vlgmr.msra.gmra.mrb[0].mxu0 %v207_v20 }
  0x84   :  { %v196_v27 = vpop.permute.xlu0 %195 }
 0x10c   :  { %v179_v22 = vpop.f32.mrb[0].mxu0 }
 0x10d   :  { %v185_v23 = vadd.f32 %v179_v22, %v21_v21  ;;  %v181_v24 = vpop.f32.mrb[1].mxu0 }
 0x10e   :  { %v182_v25 = vpop.f32.mrb[2].mxu0 }
 0x10f   :  { %187 = vst.msk [vmem:[#allocation2] sm:$0xff] %vm19_vm0, %v185_v23  ;;  %v183_v26 = vpop.f32.mrb[3].mxu0 }
 0x116   :  { %v191_v28 = vld [vmem:[#allocation2] sm:$0xff] }
 0x117   :  { %v198_v29 = vadd.f32 %v196_v27, %v191_v28 }
 0x119   :  { %vm199_vm3 = vcmp.ge.f32.partialorder %v198_v29, 0.0  ;;  %v200_v30 = vmul.f32 0.1, %v198_v29 }
 0x11b   :  { %v201_v31 = vsel %vm199_vm3, %v198_v29, %v200_v30 }
 0x11c   :  { %202 = vst.msk [vmem:[%s322_s3] sm:$0xff] %vm19_vm0, %v201_v31 }

// kernel: squeeze.11
= control target key start
LH: loop header
LB: loop body
LE: loop exit
PB: predicated region body
PF: predicated region fallthrough
CT: control target
= control target key end

     0   :  { %s290_s8 = smov 122   ;;  %s291_s9 = smov 124   ;;  %vm7_vm0 = vcmask 15360   ;;  %s481_s0 = inlined_call_operand.vmem [shape: f32[72], index: 0, kind: input, shape index: {}]   ;;  %s482_s1 = inlined_call_operand.vmem [shape: f32[4,1,9,2], index: 1, kind: output, shape index: {}]  }
   0x1   :  { %v4_v0 = vld [vmem:[%s481_s0] sm:$0x1]  ;;  %s289_s0 = smov 126   ;;  %s292_s10 = smov 120  }
   0x2   :  { %5 = vst [vmem:[#allocation0] sm:$0x1] %v4_v0  ;;  %s293_s11 = smov 118   ;;  %s294_s12 = smov 116  }
   0x3   :  { %s295_s13 = smov 114   ;;  %s296_s14 = smov 112  }
   0x4   :  { %s297_s15 = smov 110   ;;  %s298_s16 = smov 108  }
   0x5   :  { %s299_s17 = smov 106   ;;  %s300_s18 = smov 104  }
   0x6   :  { %s301_s19 = smov 102   ;;  %s302_s20 = smov 100  }
   0x7   :  { %s303_s21 = smov 98   ;;  %s304_s22 = smov 96  }
   0x8   :  { %s305_s23 = smov 94   ;;  %s306_s24 = smov 92  }
   0x9   :  { %v9_v1 = vld [vmem:[#allocation0] sm:$0x1]   ;;  %s307_s25 = smov 90   ;;  %s308_s26 = smov 88  }
   0xa   :  { %v21_v2 = vld [vmem:[#allocation0] sm:$0x1]   ;;  %10 = vrot.lane.b32.xlu0 %v9_v1, %s289_s0  ;;  %s309_s27 = smov 86   ;;  %s310_s28 = smov 84  }
   0xb   :  { %22 = vrot.lane.b32.xlu1 %v21_v2, %s290_s8  ;;  %v15_v3 = vld [vmem:[#allocation0] sm:$0x1]   ;;  %s311_s29 = smov 82   ;;  %s312_s30 = smov 80  }
   0xc   :  { %v27_v4 = vld [vmem:[#allocation0] sm:$0x1]   ;;  %s313_s2 = smov 78   ;;  %s314_s3 = smov 76  }
   0xd   :  { %v33_v5 = vld [vmem:[#allocation0] sm:$0x1]   ;;  %s315_s4 = smov 74   ;;  %s316_s5 = smov 72  }
   0xe   :  { %16 = vrot.lane.b32.xlu0 %v15_v3, %s291_s9  ;;  %v39_v6 = vld [vmem:[#allocation0] sm:$0x1]   ;;  %s317_s0 = smov 70   ;;  %s318_s8 = smov 68  }
   0xf   :  { %28 = vrot.lane.b32.xlu1 %v27_v4, %s292_s10  ;;  %v45_v7 = vld [vmem:[#allocation0] sm:$0x1]   ;;  %s319_s9 = smov 66   ;;  %s320_s10 = smov 64  }
  0x10   :  { %v51_v8 = vld [vmem:[#allocation0] sm:$0x1]  }
  0x11   :  { %v57_v9 = vld [vmem:[#allocation0] sm:$0x1]  }
  0x12   :  { %34 = vrot.lane.b32.xlu0 %v33_v5, %s293_s11  ;;  %v63_v10 = vld [vmem:[#allocation0] sm:$0x1]   ;;  %s321_s11 = smov 62  }
  0x13   :  { %40 = vrot.lane.b32.xlu1 %v39_v6, %s294_s12  ;;  %v69_v11 = vld [vmem:[#allocation0] sm:$0x1]   ;;  %s322_s12 = smov 60  }
  0x14   :  { %v75_v12 = vld [vmem:[#allocation0] sm:$0x1]  }
  0x15   :  { %v81_v13 = vld [vmem:[#allocation0] sm:$0x1]  }
  0x16   :  { %46 = vrot.lane.b32.xlu0 %v45_v7, %s295_s13  ;;  %v87_v14 = vld [vmem:[#allocation0] sm:$0x1]   ;;  %s323_s13 = smov 58  }
  0x17   :  { %52 = vrot.lane.b32.xlu1 %v51_v8, %s296_s14  ;;  %v93_v15 = vld [vmem:[#allocation0] sm:$0x1]  }
  0x18   :  { %v99_v16 = vld [vmem:[#allocation0] sm:$0x1]  }
  0x19   :  { %v105_v17 = vld [vmem:[#allocation0] sm:$0x1]  }
  0x1a   :  { %58 = vrot.lane.b32.xlu0 %v57_v9, %s297_s15  ;;  %v111_v18 = vld [vmem:[#allocation0] sm:$0x1]  }
  0x1b   :  { %64 = vrot.lane.b32.xlu1 %v63_v10, %s298_s16  ;;  %v117_v19 = vld [vmem:[#allocation0] sm:$0x1]  }
  0x1c   :  { %v123_v20 = vld [vmem:[#allocation0] sm:$0x1]  }
  0x1d   :  { %v129_v21 = vld [vmem:[#allocation0] sm:$0x1]  }
  0x1e   :  { %70 = vrot.lane.b32.xlu0 %v69_v11, %s299_s17  ;;  %v135_v22 = vld [vmem:[#allocation0] sm:$0x1]  }
  0x1f   :  { %76 = vrot.lane.b32.xlu1 %v75_v12, %s300_s18  ;;  %v141_v23 = vld [vmem:[#allocation0] sm:$0x1]  }
  0x20   :  { %v147_v24 = vld [vmem:[#allocation0] sm:$0x1]  }
  0x21   :  { %v153_v25 = vld [vmem:[#allocation0] sm:$0x1]  }
  0x22   :  { %82 = vrot.lane.b32.xlu0 %v81_v13, %s301_s19  ;;  %v159_v26 = vld [vmem:[#allocation0] sm:$0x1]  }
  0x23   :  { %88 = vrot.lane.b32.xlu1 %v87_v14, %s302_s20  ;;  %v165_v27 = vld [vmem:[#allocation0] sm:$0x1]  }
  0x24   :  { %v171_v28 = vld [vmem:[#allocation0] sm:$0x1]  }
  0x25   :  { %v177_v29 = vld [vmem:[#allocation0] sm:$0x1]  }
  0x26   :  { %94 = vrot.lane.b32.xlu0 %v93_v15, %s303_s21  ;;  %v183_v30 = vld [vmem:[#allocation0] sm:$0x1]  }
  0x27   :  { %100 = vrot.lane.b32.xlu1 %v99_v16, %s304_s22  ;;  %v6_v31 = vld [vmem:[#allocation0] sm:$0x1]  }
  0x28   :  { %8 = vst.msk [vmem:[%s482_s1] sm:$0x1] %vm7_vm0, %v6_v31   ;;  %v189_v32 = vld [vmem:[#allocation0] sm:$0x1]  }
  0x29   :  { %v195_v33 = vld [vmem:[#allocation0] sm:$0x1]  }
  0x2a   :  { %106 = vrot.lane.b32.xlu0 %v105_v17, %s305_s23  ;;  %v201_v34 = vld [vmem:[#allocation0] sm:$0x1]  }
  0x2b   :  { %112 = vrot.lane.b32.xlu1 %v111_v18, %s306_s24  ;;  %v207_v35 = vld [vmem:[#allocation0] sm:$0x1]  }
  0x2c   :  { %v213_v36 = vld [vmem:[#allocation0] sm:$0x1]  }
  0x2e   :  { %118 = vrot.lane.b32.xlu0 %v117_v19, %s307_s25 }
  0x2f   :  { %124 = vrot.lane.b32.xlu1 %v123_v20, %s308_s26 }
  0x32   :  { %130 = vrot.lane.b32.xlu0 %v129_v21, %s309_s27 }
  0x33   :  { %136 = vrot.lane.b32.xlu1 %v135_v22, %s310_s28 }
  0x36   :  { %142 = vrot.lane.b32.xlu0 %v141_v23, %s311_s29 }
  0x37   :  { %148 = vrot.lane.b32.xlu1 %v147_v24, %s312_s30 }
  0x3a   :  { %154 = vrot.lane.b32.xlu0 %v153_v25, %s313_s2 }
  0x3b   :  { %160 = vrot.lane.b32.xlu1 %v159_v26, %s314_s3 }
  0x3e   :  { %166 = vrot.lane.b32.xlu0 %v165_v27, %s315_s4 }
  0x3f   :  { %172 = vrot.lane.b32.xlu1 %v171_v28, %s316_s5 }
  0x42   :  { %178 = vrot.lane.b32.xlu0 %v177_v29, %s317_s0 }
  0x43   :  { %184 = vrot.lane.b32.xlu1 %v183_v30, %s318_s8 }
  0x46   :  { %190 = vrot.lane.b32.xlu0 %v189_v32, %s319_s9 }
  0x47   :  { %196 = vrot.lane.b32.xlu1 %v195_v33, %s320_s10 }
  0x4a   :  { %202 = vrot.lane.b32.xlu0 %v201_v34, %s321_s11 }
  0x4b   :  { %208 = vrot.lane.b32.xlu1 %v207_v35, %s322_s12 }
  0x4e   :  { %214 = vrot.lane.b32.xlu0 %v213_v36, %s323_s13 }
  0x7c   :  { %v11_v37 = vpop.permute.xlu0 %10  }
  0x7d   :  { %v23_v38 = vpop.permute.xlu1 %22   ;;  %219 = vst.msk [vmem:[%s482_s1 + $0x1] sm:$0x1] %vm7_vm0, %v11_v37  }
  0x7e   :  { %221 = vst.msk [vmem:[%s482_s1 + $0x3] sm:$0x1] %vm7_vm0, %v23_v38  }
  0x80   :  { %v17_v39 = vpop.permute.xlu0 %16  }
  0x81   :  { %v29_v40 = vpop.permute.xlu1 %28   ;;  %220 = vst.msk [vmem:[%s482_s1 + $0x2] sm:$0x1] %vm7_vm0, %v17_v39  }
  0x82   :  { %222 = vst.msk [vmem:[%s482_s1 + $0x4] sm:$0x1] %vm7_vm0, %v29_v40  }
  0x84   :  { %v35_v41 = vpop.permute.xlu0 %34  }
  0x85   :  { %v41_v42 = vpop.permute.xlu1 %40   ;;  %223 = vst.msk [vmem:[%s482_s1 + $0x5] sm:$0x1] %vm7_vm0, %v35_v41  }
  0x86   :  { %224 = vst.msk [vmem:[%s482_s1 + $0x6] sm:$0x1] %vm7_vm0, %v41_v42  }
  0x88   :  { %v47_v43 = vpop.permute.xlu0 %46  }
  0x89   :  { %v53_v44 = vpop.permute.xlu1 %52   ;;  %225 = vst.msk [vmem:[%s482_s1 + $0x7] sm:$0x1] %vm7_vm0, %v47_v43  }
  0x8a   :  { %226 = vst.msk [vmem:[%s482_s1 + $0x8] sm:$0x1] %vm7_vm0, %v53_v44  }
  0x8c   :  { %v59_v45 = vpop.permute.xlu0 %58  }
  0x8d   :  { %v65_v46 = vpop.permute.xlu1 %64   ;;  %227 = vst.msk [vmem:[%s482_s1 + $0x10] sm:$0x1] %vm7_vm0, %v59_v45  }
  0x8e   :  { %228 = vst.msk [vmem:[%s482_s1 + $0x11] sm:$0x1] %vm7_vm0, %v65_v46  }
  0x90   :  { %v71_v47 = vpop.permute.xlu0 %70  }
  0x91   :  { %v77_v48 = vpop.permute.xlu1 %76   ;;  %229 = vst.msk [vmem:[%s482_s1 + $0x12] sm:$0x1] %vm7_vm0, %v71_v47  }
  0x92   :  { %230 = vst.msk [vmem:[%s482_s1 + $0x13] sm:$0x1] %vm7_vm0, %v77_v48  }
  0x94   :  { %v83_v49 = vpop.permute.xlu0 %82  }
  0x95   :  { %v89_v50 = vpop.permute.xlu1 %88   ;;  %231 = vst.msk [vmem:[%s482_s1 + $0x14] sm:$0x1] %vm7_vm0, %v83_v49  }
  0x96   :  { %232 = vst.msk [vmem:[%s482_s1 + $0x15] sm:$0x1] %vm7_vm0, %v89_v50  }
  0x98   :  { %v95_v51 = vpop.permute.xlu0 %94  }
  0x99   :  { %v101_v52 = vpop.permute.xlu1 %100   ;;  %233 = vst.msk [vmem:[%s482_s1 + $0x16] sm:$0x1] %vm7_vm0, %v95_v51  }
  0x9a   :  { %234 = vst.msk [vmem:[%s482_s1 + $0x17] sm:$0x1] %vm7_vm0, %v101_v52  }
  0x9c   :  { %v107_v53 = vpop.permute.xlu0 %106  }
  0x9d   :  { %v113_v54 = vpop.permute.xlu1 %112   ;;  %235 = vst.msk [vmem:[%s482_s1 + $0x18] sm:$0x1] %vm7_vm0, %v107_v53  }
  0x9e   :  { %236 = vst.msk [vmem:[%s482_s1 + $0x20] sm:$0x1] %vm7_vm0, %v113_v54  }
  0xa0   :  { %v119_v55 = vpop.permute.xlu0 %118  }
  0xa1   :  { %v125_v56 = vpop.permute.xlu1 %124   ;;  %237 = vst.msk [vmem:[%s482_s1 + $0x21] sm:$0x1] %vm7_vm0, %v119_v55  }
  0xa2   :  { %238 = vst.msk [vmem:[%s482_s1 + $0x22] sm:$0x1] %vm7_vm0, %v125_v56  }
  0xa4   :  { %v131_v57 = vpop.permute.xlu0 %130  }
  0xa5   :  { %v137_v58 = vpop.permute.xlu1 %136   ;;  %239 = vst.msk [vmem:[%s482_s1 + $0x23] sm:$0x1] %vm7_vm0, %v131_v57  }
  0xa6   :  { %240 = vst.msk [vmem:[%s482_s1 + $0x24] sm:$0x1] %vm7_vm0, %v137_v58  }
  0xa8   :  { %v143_v59 = vpop.permute.xlu0 %142  }
  0xa9   :  { %v149_v60 = vpop.permute.xlu1 %148   ;;  %241 = vst.msk [vmem:[%s482_s1 + $0x25] sm:$0x1] %vm7_vm0, %v143_v59  }
  0xaa   :  { %242 = vst.msk [vmem:[%s482_s1 + $0x26] sm:$0x1] %vm7_vm0, %v149_v60  }
  0xac   :  { %v155_v61 = vpop.permute.xlu0 %154  }
  0xad   :  { %v161_v62 = vpop.permute.xlu1 %160   ;;  %243 = vst.msk [vmem:[%s482_s1 + $0x27] sm:$0x1] %vm7_vm0, %v155_v61  }
  0xae   :  { %244 = vst.msk [vmem:[%s482_s1 + $0x28] sm:$0x1] %vm7_vm0, %v161_v62  }
  0xb0   :  { %v167_v63 = vpop.permute.xlu0 %166  }
  0xb1   :  { %v173_v0 = vpop.permute.xlu1 %172   ;;  %245 = vst.msk [vmem:[%s482_s1 + $0x30] sm:$0x1] %vm7_vm0, %v167_v63  }
  0xb2   :  { %246 = vst.msk [vmem:[%s482_s1 + $0x31] sm:$0x1] %vm7_vm0, %v173_v0  }
  0xb4   :  { %v179_v1 = vpop.permute.xlu0 %178  }
  0xb5   :  { %v185_v2 = vpop.permute.xlu1 %184   ;;  %247 = vst.msk [vmem:[%s482_s1 + $0x32] sm:$0x1] %vm7_vm0, %v179_v1  }
  0xb6   :  { %248 = vst.msk [vmem:[%s482_s1 + $0x33] sm:$0x1] %vm7_vm0, %v185_v2  }
  0xb8   :  { %v191_v3 = vpop.permute.xlu0 %190  }
  0xb9   :  { %v197_v4 = vpop.permute.xlu1 %196   ;;  %249 = vst.msk [vmem:[%s482_s1 + $0x34] sm:$0x1] %vm7_vm0, %v191_v3  }
  0xba   :  { %250 = vst.msk [vmem:[%s482_s1 + $0x35] sm:$0x1] %vm7_vm0, %v197_v4  }
  0xbc   :  { %v203_v5 = vpop.permute.xlu0 %202  }
  0xbd   :  { %v209_v6 = vpop.permute.xlu1 %208   ;;  %251 = vst.msk [vmem:[%s482_s1 + $0x36] sm:$0x1] %vm7_vm0, %v203_v5  }
  0xbe   :  { %252 = vst.msk [vmem:[%s482_s1 + $0x37] sm:$0x1] %vm7_vm0, %v209_v6  }
  0xc0   :  { %v215_v7 = vpop.permute.xlu0 %214  }
  0xc1   :  { %253 = vst.msk [vmem:[%s482_s1 + $0x38] sm:$0x1] %vm7_vm0, %v215_v7  }

// kernel: discriminator_cqt_forward.12
= control target key start
LH: loop header
LB: loop body
LE: loop exit
PB: predicated region body
PF: predicated region fallthrough
CT: control target
= control target key end

     0   :  { %vm19_vm0 = vcmask 588800   ;;  %v163_v0 = vmov 0.0   ;;  %vm164_vm1 = vmmov 0   ;;  %v165_v2 = vmov 0   ;;  %s214_s0 = inlined_call_operand.vmem [shape: bf16[1,72,72], index: 0, kind: input, shape index: {}]   ;;  %s215_s2 = inlined_call_operand.vmem [shape: f32[1,8,1], index: 2, kind: input, shape index: {}]   ;;  %s216_s1 = inlined_call_operand.vmem [shape: bf16[1,8,72], index: 1, kind: input, shape index: {}]   ;;  %s217_s3 = inlined_call_operand.vmem [shape: f32[1,8,72], index: 3, kind: output, shape index: {}]  }
   0x1   :  { %140 = vmatprep.subr.bf16.mxu0 %v163_v0  ;;  %v158_v1 = vld [vmem:[%s214_s0] sm:$0xff]   ;;  %150 = vmatprep.mubr.msk.bf16.mxu0 %vm164_vm1, %v163_v0  ;;  %20 = vst.msk [vmem:[#allocation2] sm:$0xff] %vm19_vm0, %v163_v0  ;;  %v159_v3 = vld [vmem:[%s214_s0 + $0x8] sm:$0xff]   ;;  %v160_v5 = vld [vmem:[%s214_s0 + $0x10] sm:$0xff]   ;;  %vm63_vm2 = vcmask 1043456  }
   0x2   :  { %157 = vset.pattern.permute.xlu0 %v165_v2  ;;  %141 = vmatpush3.bf16.msra.mxu0 %v158_v1  ;;  %v113_v4 = vld [vmem:[%s215_s2] sm:$0xff]  ;;  %v161_v6 = vld [vmem:[%s214_s0 + $0x18] sm:$0xff]  }
   0x3   :  { %142 = vmatprep.subr.bf16.mxu0 %v163_v0  ;;  %116 = vperm.xlu0 %157, %v113_v4   ;;  %v162_v7 = vld [vmem:[%s214_s0 + $0x20] ss:$0 sps:$4 sm:$0xff]  }
   0x4   :  { %v65_v8 = vsel %vm63_vm2, %v162_v7, 0  ;;  %v22_v9 = vld [vmem:[%s216_s1] sm:$0xf] }
   0x6   :  { %143 = vmatpush3.bf16.msra.mxu0 %v159_v3 }
   0x7   :  { %144 = vmatprep.subr.bf16.mxu0 %v163_v0 }
   0x8   :  { %v21_v10 = vld [vmem:[#allocation2] sm:$0xff] }
   0xa   :  { %145 = vmatpush3.bf16.msra.mxu0 %v160_v5 }
   0xb   :  { %146 = vmatprep.subr.bf16.mxu0 %v163_v0 }
   0xe   :  { %147 = vmatpush3.bf16.msra.mxu0 %v161_v6 }
   0xf   :  { %148 = vmatprep.subr.bf16.mxu0 %v163_v0 }
  0x12   :  { %149 = vmatpush3.bf16.msra.mxu0 %v65_v8 }
  0x15   :  { %151 = vmatmul.mubr.msk.bf16.vlgmr.msra.gmra.mrb[0].mxu0 %vm19_vm0, %v22_v9 }
  0x82   :  { %v117_v16 = vpop.permute.xlu0 %116 }
  0xe8   :  { %v101_v11 = vpop.f32.mrb[0].mxu0 }
  0xe9   :  { %v107_v12 = vadd.f32 %v101_v11, %v21_v10  ;;  %v152_v13 = vpop.f32.mrb[1].mxu0 }
  0xea   :  { %v104_v14 = vpop.f32.mrb[2].mxu0 }
  0xeb   :  { %108 = vst.msk [vmem:[#allocation2] sm:$0xff] %vm19_vm0, %v107_v12  ;;  %v153_v15 = vpop.f32.mrb[3].mxu0 }
  0xf2   :  { %v112_v17 = vld [vmem:[#allocation2] sm:$0xff] }
  0xf3   :  { %v119_v18 = vadd.f32 %v117_v16, %v112_v17 }
  0xf5   :  { %vm120_vm3 = vcmp.ge.f32.partialorder %v119_v18, 0.0  ;;  %v121_v19 = vmul.f32 0.1, %v119_v18 }
  0xf7   :  { %v122_v20 = vsel %vm120_vm3, %v119_v18, %v121_v19 }
  0xf8   :  { %123 = vst.msk [vmem:[%s217_s3] sm:$0xff] %vm19_vm0, %v122_v20 }

</bundles_post_ra>
